<compile_context>
chip_gen: v7x
topology: tpu7x:2x2x1
jax: 0.10.0
libtpu: 0.0.40
codegen_flags: <defaults>
</compile_context>

<pallas_src>
import math

import numpy as np

import jax
import jax.numpy as jnp
from jax.experimental import pallas as pl
from jax.experimental.pallas import tpu as pltpu

L2_EPS = 1e-12  # F.normalize(p=2, dim=-1) default eps


def _make_cosine_codebook_kernel(emit_dist, emit_flatten, mm_dtype,
                                 gather_in_kernel):
    """Kernel factory; optional outputs / dtypes are baked in at trace time."""

    def kernel(*refs):
        it = iter(refs)
        x_ref = next(it)                                    # (tn, d) token tile
        eraw_ref = next(it) if gather_in_kernel else None   # (c, d) raw codebook
        ent_ref = next(it)                                  # (d, c) l2norm(embed)^T
        q_ref = next(it) if gather_in_kernel else None      # (tn, d) quantize
        ind_ref = next(it)                                  # (1, tn) indices
        dist_ref = next(it) if emit_dist else None          # (tn, c)
        fl_ref = next(it) if emit_flatten else None         # (tn, d)

        x_nat = x_ref[...]
        xf = x_nat.astype(jnp.float32)
        sumsq = jnp.sum(xf * xf, axis=-1, keepdims=True)
        scale = jax.lax.rsqrt(jnp.maximum(sumsq, L2_EPS * L2_EPS))   # EUP slot

        # l2norm(flatten).  If x is already in the matmul dtype and the f32
        # copy is not needed as an output, scale directly in that dtype
        # (skips one full-width f32 multiply + recast per tile).
        if emit_flatten or mm_dtype is None or x_nat.dtype != mm_dtype:
            xn_f32 = xf * scale
            xn_mm = xn_f32 if mm_dtype is None else xn_f32.astype(mm_dtype)
        else:
            xn_f32 = None
            xn_mm = x_nat * scale.astype(mm_dtype)

        # dist = flatten @ l2norm(embed)^T  (MXU, f32 accumulate).
        # ent_ref is pre-normalized, pre-transposed and pre-cast in the wrapper.
        dist = jnp.dot(xn_mm, ent_ref[...], preferred_element_type=jnp.float32)

        # argmax along codes; min-of-matching-indices == torch first-max tie break.
        c = dist.shape[-1]
        iota = jax.lax.broadcasted_iota(jnp.int32, dist.shape, 1)
        m = jnp.max(dist, axis=-1, keepdims=True)
        ind = jnp.min(jnp.where(dist == m, iota, c), axis=-1)        # (tn,)

        # lane-dense index store (unmasked vst when tn % 128 == 0)
        ind_ref[...] = ind[None, :].astype(jnp.int32)

        if gather_in_kernel:
            # gather RAW embed rows via one-hot matmul in the codebook's dtype
            # (exact: one-hot entries are 0/1, rows pass through into f32 acc).
            e_raw = eraw_ref[...]                                     # (c, d)
            onehot = (iota == ind[:, None]).astype(e_raw.dtype)       # (tn, c)
            q = jnp.dot(onehot, e_raw, preferred_element_type=jnp.float32)
            q_ref[...] = q.astype(q_ref.dtype)

        if emit_dist:
            dist_ref[...] = dist.astype(dist_ref.dtype)
        if emit_flatten:
            fl_ref[...] = xn_f32.astype(fl_ref.dtype)

    return kernel


def _vmem_budget_bytes():
    """Physical VMEM per core; conservative 64 MiB (v7x floor) if unknown."""
    try:
        return int(min(pltpu.get_tpu_info().vmem_capacity_bytes, 128 << 20))
    except Exception:
        return 64 << 20


def _is_multi_tensorcore():
    """True only on chips with >1 TensorCore (v7x); v5e / v6e are single-TC."""
    try:
        kind = jax.devices()[0].device_kind.lower()
        return ("v7" in kind) or ("7x" in kind)
    except Exception:
        return False


def _pick_tile_n(n_tokens, want, tn_max, multi_tc):
    """Token-tile size: as big as the VMEM budget allows (multiple of 128),
    never larger than the token count (blocks never exceed the array), and
    split into >=2 grid steps only on multi-TC chips (v7x) so the single
    'parallel' axis can shard across both cores."""
    want = max(128, (min(want, tn_max) // 128) * 128)
    if n_tokens > want:
        return want
    if multi_tc and n_tokens > 128:
        half = -(-n_tokens // 2)
        return max(128, -(-half // 128) * 128)
    return n_tokens                      # single exact-fit tile (v5e / v6e)


def cosine_codebook_forward(x, embed, *,
                            tile_n=1024,
                            return_dist=True,
                            return_flatten=True,
                            dist_matmul_dtype=jnp.bfloat16,
                            dist_out_dtype=jnp.float32,
                            flatten_out_dtype=jnp.float32,
                            gather_in_kernel=None):
    """x: (..., d) or (1, ..., d); embed: (1, c, d).

    Returns the module's 5-tuple (quantize, embed_ind, dist, embed, flatten).
    return_dist / return_flatten=False skip those (bandwidth-dominant) outputs
    and return None in the corresponding slots.  dist_matmul_dtype=None runs
    the cosine matmul in f32 (bit-faithful, ~3x more MXU work than bf16).
    """
    needs_codebook_dim = x.ndim < 4
    if needs_codebook_dim:
        x = x[None]
    h, d = x.shape[0], x.shape[-1]
    assert h == 1 and embed.shape[0] == 1, "kernel specialized to num_codebooks == 1"
    c = embed.shape[1]
    mid = x.shape[1:-1]
    N = math.prod(mid)

    mm_dt = None if dist_matmul_dtype is None else np.dtype(dist_matmul_dtype)
    if gather_in_kernel is None:
        # For large codebooks the one-hot gather matmul costs as much MXU time
        # as the dist matmul itself; gather raw rows outside the kernel instead.
        gather_in_kernel = c <= 1024

    # ---- hoisted (one-time) codebook preprocessing -------------------------
    e_raw = embed[0]                                    # (c, d) raw codebook
    e32 = e_raw.astype(jnp.float32)
    en_t = (e32 * jax.lax.rsqrt(
        jnp.maximum(jnp.sum(e32 * e32, axis=-1, keepdims=True),
                    L2_EPS * L2_EPS))).T                # (d, c) l2-normalized
    if mm_dt is not None:
        en_t = en_t.astype(mm_dt)                       # pre-cast: no per-step VPU cast
    if gather_in_kernel:
        # bf16/f32 codebooks stay as-is (one-hot gather is exact either way)
        if e_raw.dtype in (np.dtype(jnp.bfloat16), np.dtype(jnp.float32)):
            e_gather = e_raw
        else:
            e_gather = e_raw.astype(jnp.float32)

    flat_in = x.reshape(N, d)                           # native dtype, NO pad

    # ---- generation-aware tile size / VMEM budget ---------------------------
    bytes_of = lambda dt: np.dtype(dt).itemsize
    mm_bytes = bytes_of(mm_dt if mm_dt is not None else jnp.float32)
    per_row = 2 * d * bytes_of(x.dtype) + 2 * 4          # x tile + ind slab (dbl-buf)
    per_row += c * 4 + d * 4                             # f32 intermediates (dist, xn)
    if gather_in_kernel:
        per_row += 2 * d * bytes_of(embed.dtype) + c * bytes_of(e_gather.dtype)
    if return_dist:
        per_row += 2 * c * bytes_of(dist_out_dtype)
    if return_flatten:
        per_row += 2 * d * bytes_of(flatten_out_dtype)
    codebook_bytes = 2 * d * c * mm_bytes
    if gather_in_kernel:
        codebook_bytes += 2 * c * d * bytes_of(e_gather.dtype)

    budget = _vmem_budget_bytes()
    tn_max = (int(budget * 0.7) - codebook_bytes - (4 << 20)) // max(per_row, 1)
    tn_max = max(128, (tn_max // 128) * 128)
    tn = _pick_tile_n(N, tile_n, tn_max, _is_multi_tensorcore())
    num_tiles = pl.cdiv(N, tn)
    vmem_limit = int(min(max(codebook_bytes + tn * per_row + (8 << 20),
                             32 << 20), budget))

    # ---- specs --------------------------------------------------------------
    in_specs = [pl.BlockSpec((tn, d), lambda i: (i, 0))]            # token tile
    operands = [flat_in]
    if gather_in_kernel:
        in_specs.append(pl.BlockSpec((c, d), lambda i: (0, 0)))     # raw codebook (resident)
        operands.append(e_gather)
    in_specs.append(pl.BlockSpec((d, c), lambda i: (0, 0)))         # l2norm(embed)^T (resident)
    operands.append(en_t)

    out_shapes, out_specs = [], []
    if gather_in_kernel:
        out_shapes.append(jax.ShapeDtypeStruct((N, d), embed.dtype))        # quantize
        out_specs.append(pl.BlockSpec((tn, d), lambda i: (i, 0)))
    out_shapes.append(jax.ShapeDtypeStruct((1, num_tiles * tn), jnp.int32))  # ind slab
    out_specs.append(pl.BlockSpec((1, tn), lambda i: (0, i)))
    if return_dist:
        out_shapes.append(jax.ShapeDtypeStruct((N, c), dist_out_dtype))
        out_specs.append(pl.BlockSpec((tn, c), lambda i: (i, 0)))
    if return_flatten:
        out_shapes.append(jax.ShapeDtypeStruct((N, d), flatten_out_dtype))
        out_specs.append(pl.BlockSpec((tn, d), lambda i: (i, 0)))

    outs = pl.pallas_call(
        _make_cosine_codebook_kernel(return_dist, return_flatten, mm_dt,
                                     gather_in_kernel),
        out_shape=tuple(out_shapes),
        grid_spec=pltpu.PrefetchScalarGridSpec(
            num_scalar_prefetch=0,
            grid=(num_tiles,),
            in_specs=in_specs,
            out_specs=tuple(out_specs)),
        compiler_params=pltpu.CompilerParams(
            dimension_semantics=("parallel",),
            vmem_limit_bytes=vmem_limit),
    )(*operands)

    outs = list(outs)
    q_flat = outs.pop(0) if gather_in_kernel else None
    ind_flat = outs.pop(0)[0, :N]
    dist = outs.pop(0).reshape((h, N, c)) if return_dist else None
    flatten = outs.pop(0).reshape((h, N, d)) if return_flatten else None

    if not gather_in_kernel:
        q_flat = jnp.take(e_raw, ind_flat, axis=0)       # exact raw-row gather

    quantize = q_flat.reshape((h,) + mid + (d,))
    embed_ind = ind_flat.reshape((h,) + mid)
    if needs_codebook_dim:
        quantize = quantize[0]
        embed_ind = embed_ind[0]
    return quantize, embed_ind, dist, embed, flatten


if __name__ == "__main__":
    # batch=2, seq=72, dim=32, codebook_size=128, num_codebooks=1
    # (N = 144 tokens: not a multiple of 128 -> exercises the ragged-tile path)
    b, n, d = 2, 72, 32
    h, c = 1, 128

    key = jax.random.PRNGKey(0)
    kx, ke = jax.random.split(key)
    x = jax.random.normal(kx, (b, n, d), dtype=jnp.float32)

    # deterministic synthetic init mimicking uniform_init (kaiming-uniform) + l2norm
    bound = (6.0 / (c * d)) ** 0.5
    embed = jax.random.uniform(ke, (h, c, d), minval=-bound, maxval=bound,
                               dtype=jnp.float32)
    embed = embed / jnp.maximum(
        jnp.linalg.norm(embed, axis=-1, keepdims=True), L2_EPS)

    # float64 numpy reference of the torch eval forward (temperature 0)
    x_np = np.asarray(x, dtype=np.float64).reshape(1, b * n, d)
    e_np = np.asarray(embed, dtype=np.float64)
    xn_np = x_np / np.maximum(np.linalg.norm(x_np, axis=-1, keepdims=True), L2_EPS)
    en_np = e_np / np.maximum(np.linalg.norm(e_np, axis=-1, keepdims=True), L2_EPS)
    dist_np = np.einsum('hnd,hcd->hnc', xn_np, en_np)
    ind_np = np.argmax(dist_np, axis=-1)                  # (1, N)
    q_np = e_np[0][ind_np[0]].reshape(b, n, d)

    # --- A: bit-faithful f32 matmul path, forced small tile (multi-step + ragged tail)
    qa, ia, da, ea, fa = jax.block_until_ready(
        cosine_codebook_forward(x, embed, dist_matmul_dtype=jnp.float32,
                                tile_n=128))
    assert da.shape == (h, b * n, c) and fa.shape == (h, b * n, d)
    assert np.allclose(np.asarray(da), dist_np, atol=1e-4), "dist mismatch (f32)"
    assert np.allclose(np.asarray(fa), xn_np, atol=1e-5), "flatten mismatch (f32)"
    assert np.array_equal(np.asarray(ia), ind_np.reshape(b, n)), "index mismatch (f32)"
    assert np.allclose(np.asarray(qa), q_np, atol=1e-6), "quantize mismatch (f32)"
    assert np.array_equal(np.asarray(ea), np.asarray(embed)), "embed passthrough mismatch"

    # --- B: default path (bf16 MXU dist matmul, auto tile, in-kernel raw gather)
    qb, ib, db, _, fb = jax.block_until_ready(cosine_codebook_forward(x, embed))
    assert np.allclose(np.asarray(fb), xn_np, atol=1e-5), "flatten mismatch (bf16 path)"
    assert np.allclose(np.asarray(db), dist_np, atol=2e-2), "dist mismatch (bf16 path)"
    ib_f = np.asarray(ib).reshape(-1)
    assert np.array_equal(ib_f, np.argmax(np.asarray(db)[0], axis=-1)), \
        "argmax inconsistent with returned dist"
    assert np.allclose(np.asarray(qb).reshape(-1, d), np.asarray(embed[0])[ib_f],
                       atol=1e-6), "quantize != raw embed rows (bf16 path)"

    # --- C: lean path (no dist/flatten HBM writes) + wrapper-side raw-row gather
    qc, ic, dc, _, fc = jax.block_until_ready(
        cosine_codebook_forward(x, embed, return_dist=False, return_flatten=False,
                                gather_in_kernel=False))
    assert dc is None and fc is None
    ic_f = np.asarray(ic).reshape(-1)
    assert ic_f.min() >= 0 and ic_f.max() < c, "index out of range (lean path)"
    assert np.array_equal(np.asarray(qc).reshape(-1, d), np.asarray(embed[0])[ic_f]), \
        "lean-path quantize != raw embed rows"

    print("KERNEL_OK")
</pallas_src>

<mosaic_0001>
module attributes {stable_mosaic.version = 11 : i64} {
  func.func @kernel(%arg0: i32, %arg1: memref<128x32xf32, #tpu.memory_space<vmem>>, %arg2: memref<128x32xf32, #tpu.memory_space<vmem>>, %arg3: memref<32x128xf32, #tpu.memory_space<vmem>>, %arg4: memref<128x32xf32, #tpu.memory_space<vmem>>, %arg5: memref<1x128xi32, #tpu.memory_space<vmem>>, %arg6: memref<128x128xf32, #tpu.memory_space<vmem>>, %arg7: memref<128x32xf32, #tpu.memory_space<vmem>>) attributes {dimension_semantics = [#tpu.dimension_semantics<parallel>], iteration_bounds = array<i64: 2>, scalar_prefetch = 0 : i64, scratch_operands = 0 : i64, tpu.core_type = #tpu.core_type<tc>, window_params = [{transform_indices = @transform_0, window_bounds = array<i64: 128, 32>}, {pipeline_mode = #tpu.pipeline_mode<synchronous>, transform_indices = @transform_1, window_bounds = array<i64: 128, 32>}, {pipeline_mode = #tpu.pipeline_mode<synchronous>, transform_indices = @transform_2, window_bounds = array<i64: 32, 128>}, {transform_indices = @transform_3, window_bounds = array<i64: 128, 32>}, {transform_indices = @transform_4, window_bounds = array<i64: 1, 128>}, {transform_indices = @transform_5, window_bounds = array<i64: 128, 128>}, {transform_indices = @transform_6, window_bounds = array<i64: 128, 32>}]} {
    %c0 = arith.constant 0 : index
    %c0_0 = arith.constant 0 : index
    %0 = vector.load %arg1[%c0, %c0_0] : memref<128x32xf32, #tpu.memory_space<vmem>>, vector<128x32xf32>
    %1 = arith.mulf %0, %0 : vector<128x32xf32>
    %cst = arith.constant dense<0.000000e+00> : vector<128xf32>
    %2 = vector.multi_reduction <add>, %1, %cst [1] : vector<128x32xf32> to vector<128xf32>
    %3 = vector.shape_cast %2 : vector<128xf32> to vector<128x1xf32>
    %cst_1 = arith.constant 1.000000e-24 : f32
    %4 = vector.broadcast %cst_1 : f32 to vector<128x1xf32>
    %5 = arith.maximumf %3, %4 : vector<128x1xf32>
    %6 = math.rsqrt %5 : vector<128x1xf32>
    %7 = vector.broadcast %6 : vector<128x1xf32> to vector<128x32xf32>
    %8 = arith.mulf %0, %7 : vector<128x32xf32>
    %c0_2 = arith.constant 0 : index
    %c0_3 = arith.constant 0 : index
    %9 = vector.load %arg3[%c0_2, %c0_3] : memref<32x128xf32, #tpu.memory_space<vmem>>, vector<32x128xf32>
    %cst_4 = arith.constant dense<0.000000e+00> : vector<128x128xf32>
    %10 = tpu.matmul %8, %9, %cst_4 {dimension_numbers = #tpu.dot_dimension_numbers<[1], [0], [0], [1], [0, 0, 1, 1], [], []>} : vector<128x32xf32>, vector<32x128xf32>, vector<128x128xf32> -> vector<128x128xf32>
    %11 = tpu.iota {dimensions = array<i32: 1>} : vector<128x128xi32>
    %cst_5 = arith.constant dense<0xFF800000> : vector<128xf32>
    %12 = vector.multi_reduction <maximumf>, %10, %cst_5 [1] : vector<128x128xf32> to vector<128xf32>
    %13 = vector.shape_cast %12 : vector<128xf32> to vector<128x1xf32>
    %14 = vector.broadcast %13 : vector<128x1xf32> to vector<128x128xf32>
    %15 = arith.cmpf oeq, %10, %14 : vector<128x128xf32>
    %c128_i32 = arith.constant 128 : i32
    %16 = vector.broadcast %c128_i32 : i32 to vector<128x128xi32>
    %17 = arith.select %15, %11, %16 : vector<128x128xi1>, vector<128x128xi32>
    %cst_6 = arith.constant dense<2147483647> : vector<128xi32>
    %18 = vector.multi_reduction <minsi>, %17, %cst_6 [1] : vector<128x128xi32> to vector<128xi32>
    %19 = vector.shape_cast %18 : vector<128xi32> to vector<1x128xi32>
    %c0_7 = arith.constant 0 : index
    %c0_8 = arith.constant 0 : index
    %20 = vector.load %arg5[%c0_7, %c0_8] : memref<1x128xi32, #tpu.memory_space<vmem>>, vector<1x128xi32>
    tpu.vector_store %arg5[%c0_7, %c0_8], %19 {strides = array<i32>} : memref<1x128xi32, #tpu.memory_space<vmem>>, vector<1x128xi32>,
    %c0_9 = arith.constant 0 : index
    %c0_10 = arith.constant 0 : index
    %21 = vector.load %arg2[%c0_9, %c0_10] : memref<128x32xf32, #tpu.memory_space<vmem>>, vector<128x32xf32>
    %22 = vector.shape_cast %18 : vector<128xi32> to vector<128x1xi32>
    %23 = vector.broadcast %22 : vector<128x1xi32> to vector<128x128xi32>
    %24 = arith.cmpi eq, %11, %23 : vector<128x128xi32>
    %25 = arith.extui %24 : vector<128x128xi1> to vector<128x128xi32>
    %26 = arith.sitofp %25 : vector<128x128xi32> to vector<128x128xf32>
    %cst_11 = arith.constant dense<0.000000e+00> : vector<128x32xf32>
    %27 = tpu.matmul %26, %21, %cst_11 {dimension_numbers = #tpu.dot_dimension_numbers<[1], [0], [0], [1], [0, 0, 1, 1], [], []>} : vector<128x128xf32>, vector<128x32xf32>, vector<128x32xf32> -> vector<128x32xf32>
    %c0_12 = arith.constant 0 : index
    %c0_13 = arith.constant 0 : index
    %28 = vector.load %arg4[%c0_12, %c0_13] : memref<128x32xf32, #tpu.memory_space<vmem>>, vector<128x32xf32>
    tpu.vector_store %arg4[%c0_12, %c0_13], %27 {strides = array<i32>} : memref<128x32xf32, #tpu.memory_space<vmem>>, vector<128x32xf32>,
    %c0_14 = arith.constant 0 : index
    %c0_15 = arith.constant 0 : index
    %29 = vector.load %arg6[%c0_14, %c0_15] : memref<128x128xf32, #tpu.memory_space<vmem>>, vector<128x128xf32>
    tpu.vector_store %arg6[%c0_14, %c0_15], %10 {strides = array<i32>} : memref<128x128xf32, #tpu.memory_space<vmem>>, vector<128x128xf32>,
    %c0_16 = arith.constant 0 : index
    %c0_17 = arith.constant 0 : index
    %30 = vector.load %arg7[%c0_16, %c0_17] : memref<128x32xf32, #tpu.memory_space<vmem>>, vector<128x32xf32>
    tpu.vector_store %arg7[%c0_16, %c0_17], %8 {strides = array<i32>} : memref<128x32xf32, #tpu.memory_space<vmem>>, vector<128x32xf32>,
    return
  }
  func.func @transform_0(%arg0: i32) -> (i32, i32) {
    %c0_i32 = arith.constant 0 : i32
    %c0_i32_0 = arith.constant 0 : i32
    return %arg0, %c0_i32 : i32, i32
  }
  func.func @transform_1(%arg0: i32) -> (i32, i32) {
    %c0_i32 = arith.constant 0 : i32
    %c0_i32_0 = arith.constant 0 : i32
    %c0_i32_1 = arith.constant 0 : i32
    return %c0_i32, %c0_i32_0 : i32, i32
  }
  func.func @transform_2(%arg0: i32) -> (i32, i32) {
    %c0_i32 = arith.constant 0 : i32
    %c0_i32_0 = arith.constant 0 : i32
    %c0_i32_1 = arith.constant 0 : i32
    return %c0_i32, %c0_i32_0 : i32, i32
  }
  func.func @transform_3(%arg0: i32) -> (i32, i32) {
    %c0_i32 = arith.constant 0 : i32
    %c0_i32_0 = arith.constant 0 : i32
    return %arg0, %c0_i32 : i32, i32
  }
  func.func @transform_4(%arg0: i32) -> (i32, i32) {
    %c0_i32 = arith.constant 0 : i32
    %c0_i32_0 = arith.constant 0 : i32
    return %c0_i32, %arg0 : i32, i32
  }
  func.func @transform_5(%arg0: i32) -> (i32, i32) {
    %c0_i32 = arith.constant 0 : i32
    %c0_i32_0 = arith.constant 0 : i32
    return %arg0, %c0_i32 : i32, i32
  }
  func.func @transform_6(%arg0: i32) -> (i32, i32) {
    %c0_i32 = arith.constant 0 : i32
    %c0_i32_0 = arith.constant 0 : i32
    return %arg0, %c0_i32 : i32, i32
  }
}

</mosaic_0001>

<bundles_post_ra>
// kernel: tpu_custom_call.1
= control target key start
LH: loop header
LB: loop body
LE: loop exit
PB: predicated region body
PF: predicated region fallthrough
CT: control target
= control target key end

     0   :  { %s3689_s0 = inlined_call_operand.vmem [shape: f32[144,32], index: 0, kind: input, shape index: {}]   ;;  %s3690_s1 = inlined_call_operand.vmem [shape: f32[128,32], index: 1, kind: input, shape index: {}]   ;;  %s3691_s2 = inlined_call_operand.vmem [shape: f32[32,128], index: 2, kind: input, shape index: {}]   ;;  %s3692_s3 = inlined_call_operand.vmem [shape: f32[144,32], index: 3, kind: output, shape index: {0}]   ;;  %s3693_s4 = inlined_call_operand.hbm [shape: s32[1,256], index: 4, kind: output, shape index: {1}]   ;;  %s3694_s5 = inlined_call_operand.hbm [shape: f32[144,128], index: 5, kind: output, shape index: {2}]   ;;  %s3695_s6 = inlined_call_operand.vmem [shape: f32[144,32], index: 6, kind: output, shape index: {3}]  }
   0x1   :  { %3697 = sst [smem:[#allocation11_spill]] %s3689_s0 }
   0x2   :  { %3698 = sst [smem:[#allocation12_spill]] %s3690_s1 }
   0x3   :  { %3699 = sst [smem:[#allocation13_spill]] %s3691_s2 }
   0x4   :  { %3700 = sst [smem:[#allocation14_spill]] %s3692_s3 }
   0x5   :  { %12 = vsyncpa [#allocation4], 0 }
   0x6   :  { %14 = vsyncpa [#allocation4 + $0x1], 0 }
   0x7   :  { %15 = vsyncpa [#allocation6], 0 }
   0x8   :  { %17 = vsyncpa [#allocation6 + $0x1], 0  ;;  %s2693_s21 = smov 0   ;;  %s2695_s22 = smov 0  }
   0x9   :  { %s2697_s23 = smov 0   ;;  %s2699_s24 = smov 0  }
   0xa LB: > { %s2714_s25 = sadd.s32 4294967295, %s2587_s24   ;;  %s1923_s26 = sadd.s32 4294967294, %s2587_s24   ;;  %s2587_s24 = sphi %s2699_s24, %s3722_s24   ;;  %s2583_s23 = sphi %s2697_s23, %s3721_s23   ;;  %s2579_s22 = sphi %s2695_s22, %s3720_s22   ;;  %s2575_s21 = sphi %s2693_s21, %s3719_s21  }
   0xb   : > { %s2718_s27 = sadd.s32 1, %s2587_s24   ;;  %s98_s28 = sadd.s32 1, %s2583_s23 }
   0xc   : > { %s95_s29 = ssub.s32 %s2587_s24, %s2718_s27  ;;  %p108_p0 = scmp.ne.s32.totalorder %s2583_s23, %s2579_s22 }
   0xd   : > { %p96_p1 = scmp.eq.s32.totalorder %s95_s29, 0  ;;  %p109_p2 = scmp.eq.s32.totalorder %s2714_s25, 1 }
   0xe   : > { %p140_p3 = scmp.ne.s32.totalorder %s2579_s22, %s2575_s21  ;;  %p141_p4 = scmp.eq.s32.totalorder %s1923_s26, 1 }
   0xf   : > { %s2729_s30 = scalar_select %p96_p1, %s2583_s23, %s98_s28  }
  0x10   : > { %p2731_p5 = por %p109_p2, %p108_p0  ;;  %p2735_p6 = por %p141_p4, %p140_p3 }
  0x11   : > { %3701 = sst [smem:[#allocation10_spill]] %s2729_s30  ;;  %p1926_p7 = scmp.ge.s32.totalorder %s2587_s24, 1 }
  0x12   : > { %p234_p8 = scmp.lt.s32.totalorder %s2587_s24, 3 }
  0x14   : > { %p235_p9 = pnand %p1926_p7, %p234_p8 }
  0x15   : > { %s2742_s9 = sshll.u32 (!%p235_p9), %s2714_s25, 4  ;;  %s3704_s0 = sld [smem:[#allocation11_spill]] (!%p235_p9)  ;;  %vm341_vm0 = vcmask (!%p235_p9), 261120  }
  0x16   : > { %238 = sbr.rel (%p235_p9) target bundleno = 1267 (0x4f3), region = 32  ;;  %p285_p10 = scmp.lt.s32.totalorder (!%p235_p9), %s2742_s9, 17 }
  0x17   : > { %s3705_s2 = sld [smem:[#allocation13_spill]] (!%p235_p9)  ;;  %s2860_s29 = sand.u32 (!%p235_p9), 1, %s2579_s22  }
  0x18   : > { %s3706_s1 = sld [smem:[#allocation12_spill]] (!%p235_p9)  ;;  %s3696_s15 = scalar_lea.vmem (!%p235_p9), [#allocation3], %s2860_s29 }
  0x1d   : > { %s286_s10 = scalar_select %p285_p10, %s2742_s9, 17  ;;  %v438_v46 = vld [vmem:[%s3705_s2] sm:$0xff]  ;;  %v439_v47 = vld [vmem:[%s3705_s2 + $0x8] sm:$0xff]  ;;  %v440_v51 = vld [vmem:[%s3705_s2 + $0x10] sm:$0xff] }
  0x1e   : > { %v2167_v48 = vpack.c.bf16 %v439_v47, %v438_v46  ;;  %v441_v52 = vld [vmem:[%s3705_s2 + $0x18] sm:$0xff]  ;;  %s1313_s18 = ssub.s32 (%p2731_p5), 18, %s2742_s9  ;;  %s2020_s19 = sshll.u32 (%p2731_p5), %s2714_s25, 7 }
  0x1f   : > { %s1931_s11 = sshll.u32 %s286_s10, 3  ;;  %v2171_v53 = vpack.c.bf16 %v441_v52, %v440_v51  ;;  %s2863_s10 = sshll.u32 %s2860_s29, 7 }
  0x20   : > { %s2749_s14 = scalar_lea.vmem %s3704_s0, %s1931_s11  ;;  %2168 = vmatprep.subr.bf16.mxu0 %v2167_v48  ;;  %s2869_s11 = scalar_lea.vmem [#allocation7], %s2863_s10  }
  0x21   : > { %v2752_v0 = vld [vmem:[%s2749_s14] sm:$0xff]  ;;  %v2755_v1 = vld [vmem:[%s2749_s14 + $0x10] sm:$0xff]  ;;  %v2758_v2 = vld [vmem:[%s2749_s14 + $0x8] sm:$0xff]  ;;  %2170 = vmatpush3.bf16.msra.mxu0 %v2167_v48  ;;  %s2933_s12 = scalar_lea.vmem [#allocation5], %s2863_s10  ;;  %s3385_s16 = scalar_lea.vmem [#allocation2], %s2863_s10  }
  0x22   : > { %v325_v3 = vmul.f32 %v2752_v0, %v2752_v0  ;;  %v327_v4 = vmul.f32 %v2755_v1, %v2755_v1  ;;  %v326_v5 = vmul.f32 %v2758_v2, %v2758_v2  ;;  %v2767_v6 = vld [vmem:[%s2749_s14 + $0x18] sm:$0xff]  ;;  %v2772_v8 = vld [vmem:[%s2749_s14 + $0x20] sm:$0xff]  ;;  %v2775_v9 = vld [vmem:[%s2749_s14 + $0x28] sm:$0xff]  ;;  %2172 = vmatprep.subr.bf16.mxu0 %v2171_v53  ;;  %p1314_p11 = scmp.lt.s32.totalorder (%p2731_p5), %s1313_s18, 16  ;;  %s3707_s3 = sld [smem:[#allocation14_spill]] (%p2731_p5) }
  0x23   : > { %v328_v7 = vmul.f32 %v2767_v6, %v2767_v6  ;;  %v329_v14 = vmul.f32 %v2772_v8, %v2772_v8  ;;  %v330_v15 = vmul.f32 %v2775_v9, %v2775_v9  ;;  %v2786_v16 = vld [vmem:[%s2749_s14 + $0x30] sm:$0xff]  ;;  %v2789_v17 = vld [vmem:[%s2749_s14 + $0x38] sm:$0xff]  ;;  %v2798_v22 = vld [vmem:[%s2749_s14 + $0x40] sm:$0xff] }
  0x24   : > { %v342_v10 = vsel %vm341_vm0, %v325_v3, 0.0  ;;  %v348_v11 = vsel %vm341_vm0, %v327_v4, 0.0  ;;  %v345_v12 = vsel %vm341_vm0, %v326_v5, 0.0  ;;  %v331_v20 = vmul.f32 %v2786_v16, %v2786_v16  ;;  %v2801_v23 = vld [vmem:[%s2749_s14 + $0x48] sm:$0xff]  ;;  %v2810_v28 = vld [vmem:[%s2749_s14 + $0x50] sm:$0xff]  ;;  %v2813_v29 = vld [vmem:[%s2749_s14 + $0x58] sm:$0xff] }
  0x25   : > { %343 = vadd.xlane.f32.xlu0 %v342_v10  ;;  %349 = vadd.xlane.f32.xlu1 %v348_v11  ;;  %v351_v13 = vsel %vm341_vm0, %v328_v7, 0.0  ;;  %v354_v18 = vsel %vm341_vm0, %v329_v14, 0.0  ;;  %v357_v19 = vsel %vm341_vm0, %v330_v15, 0.0  ;;  %v332_v21 = vmul.f32 %v2789_v17, %v2789_v17  ;;  %v2822_v34 = vld [vmem:[%s2749_s14 + $0x60] sm:$0xff]  ;;  %v2825_v35 = vld [vmem:[%s2749_s14 + $0x68] sm:$0xff]  ;;  %v2834_v40 = vld [vmem:[%s2749_s14 + $0x70] sm:$0xff] }
  0x26   : > { %v360_v24 = vsel %vm341_vm0, %v331_v20, 0.0  ;;  %v333_v26 = vmul.f32 %v2798_v22, %v2798_v22  ;;  %v334_v27 = vmul.f32 %v2801_v23, %v2801_v23  ;;  %v335_v32 = vmul.f32 %v2810_v28, %v2810_v28  ;;  %v2837_v41 = vld [vmem:[%s2749_s14 + $0x78] sm:$0xff]  ;;  %2174 = vmatpush3.bf16.msra.mxu0 %v2171_v53 }
  0x27   : > { %v363_v25 = vsel %vm341_vm0, %v332_v21, 0.0  ;;  %v336_v33 = vmul.f32 %v2813_v29, %v2813_v29  ;;  %v337_v38 = vmul.f32 %v2822_v34, %v2822_v34  ;;  %v338_v39 = vmul.f32 %v2825_v35, %v2825_v35 }
  0x28   : > { %v366_v30 = vsel %vm341_vm0, %v333_v26, 0.0  ;;  %v369_v31 = vsel %vm341_vm0, %v334_v27, 0.0  ;;  %v372_v36 = vsel %vm341_vm0, %v335_v32, 0.0  ;;  %v339_v44 = vmul.f32 %v2834_v40, %v2834_v40  ;;  %s3428_s28 = scalar_lea.vmem (%p2731_p5), %s3707_s3, %s2020_s19  }
  0x29   : > { %346 = vadd.xlane.f32.xlu0 %v345_v12  ;;  %352 = vadd.xlane.f32.xlu1 %v351_v13  ;;  %v375_v37 = vsel %vm341_vm0, %v336_v33, 0.0  ;;  %v378_v42 = vsel %vm341_vm0, %v337_v38, 0.0  ;;  %v381_v43 = vsel %vm341_vm0, %v338_v39, 0.0  ;;  %v340_v45 = vmul.f32 %v2837_v41, %v2837_v41 }
  0x2a   : > { %v384_v49 = vsel %vm341_vm0, %v339_v44, 0.0 }
  0x2b   : > { %v387_v50 = vsel %vm341_vm0, %v340_v45, 0.0 }
  0x2d   : > { %355 = vadd.xlane.f32.xlu0 %v354_v18  ;;  %358 = vadd.xlane.f32.xlu1 %v357_v19 }
  0x31   : > { %361 = vadd.xlane.f32.xlu0 %v360_v24  ;;  %364 = vadd.xlane.f32.xlu1 %v363_v25 }
  0x35   : > { %367 = vadd.xlane.f32.xlu0 %v366_v30  ;;  %370 = vadd.xlane.f32.xlu1 %v369_v31 }
  0x39   : > { %373 = vadd.xlane.f32.xlu0 %v372_v36  ;;  %376 = vadd.xlane.f32.xlu1 %v375_v37 }
  0x3d   : > { %379 = vadd.xlane.f32.xlu0 %v378_v42  ;;  %382 = vadd.xlane.f32.xlu1 %v381_v43 }
  0x41   : > { %385 = vadd.xlane.f32.xlu0 %v384_v49  ;;  %388 = vadd.xlane.f32.xlu1 %v387_v50 }
  0xb2   : > { %v344_v54 = vpop.xlane.xlu0 %343  ;;  %v350_v55 = vpop.xlane.xlu1 %349 }
  0xb3   : > { %v390_v56 = vmax.f32 %v344_v54, 1e-24  ;;  %v392_v57 = vmax.f32 %v350_v55, 1e-24 }
  0xb5   : > { %2397 = vrsqrt.f32 %v390_v56 }
  0xb6   : > { %2399 = vrsqrt.f32 %v392_v57  ;;  %v347_v58 = vpop.xlane.xlu0 %346  ;;  %v353_v59 = vpop.xlane.xlu1 %352 }
  0xb7   : > { %v391_v60 = vmax.f32 %v347_v58, 1e-24  ;;  %v393_v61 = vmax.f32 %v353_v59, 1e-24 }
  0xb9   : > { %2401 = vrsqrt.f32 %v391_v60 }
  0xba   : > { %2403 = vrsqrt.f32 %v393_v61  ;;  %v356_v62 = vpop.xlane.xlu0 %355  ;;  %v359_v63 = vpop.xlane.xlu1 %358 }
  0xbb   : > { %v394_v3 = vmax.f32 %v356_v62, 1e-24  ;;  %v395_v4 = vmax.f32 %v359_v63, 1e-24 }
  0xbd   : > { %2405 = vrsqrt.f32 %v394_v3 }
  0xbe   : > { %2407 = vrsqrt.f32 %v395_v4  ;;  %v362_v5 = vpop.xlane.xlu0 %361  ;;  %v365_v7 = vpop.xlane.xlu1 %364 }
  0xbf   : > { %v2398_v10 = vpop.eup %2397  ;;  %v396_v11 = vmax.f32 %v362_v5, 1e-24  ;;  %v397_v12 = vmax.f32 %v365_v7, 1e-24 }
  0xc0   : > { %v2400_v13 = vpop.eup %2399  ;;  %v422_v14 = vmul.f32 %v2398_v10, %v2752_v0 }
  0xc1   : > { %2409 = vrsqrt.f32 %v396_v11  ;;  %v424_v15 = vmul.f32 %v2400_v13, %v2755_v1 }
  0xc2   : > { %2411 = vrsqrt.f32 %v397_v12  ;;  %2087 = vmatprep.mubr.msk.f32.mxu0 %vm341_vm0, %v422_v14  ;;  %1276 = vst.msk [vmem:[%s2869_s11] sm:$0xff] %vm341_vm0, %v422_v14  ;;  %v368_v18 = vpop.xlane.xlu0 %367  ;;  %v371_v19 = vpop.xlane.xlu1 %370  ;;  %v635_v12 = vlaneseq }
  0xc3   : > { %v2402_v20 = vpop.eup %2401  ;;  %v398_v21 = vmax.f32 %v368_v18, 1e-24  ;;  %v399_v24 = vmax.f32 %v371_v19, 1e-24  ;;  %1278 = vst.msk [vmem:[%s2869_s11 + $0x10] sm:$0xff] %vm341_vm0, %v424_v15 }
  0xc4   : > { %v2404_v0 = vpop.eup %2403  ;;  %v423_v1 = vmul.f32 %v2402_v20, %v2758_v2  ;;  %v2988_v13 = vand.u32 127, %v635_v12 }
  0xc5   : > { %2413 = vrsqrt.f32 %v398_v21  ;;  %v425_v25 = vmul.f32 %v2404_v0, %v2767_v6 }
  0xc6   : > { %2415 = vrsqrt.f32 %v399_v24  ;;  %2088 = vmatmul.mubr.msk.f32.vlgmr.msra.gmra.mrb[0].mxu0 %vm341_vm0, %v423_v1  ;;  %1277 = vst.msk [vmem:[%s2869_s11 + $0x8] sm:$0xff] %vm341_vm0, %v423_v1  ;;  %v374_v26 = vpop.xlane.xlu0 %373  ;;  %v377_v27 = vpop.xlane.xlu1 %376 }
  0xc7   : > { %v2406_v30 = vpop.eup %2405  ;;  %2090 = vmatprep.mubr.msk.f32.mxu0 %vm341_vm0, %v424_v15  ;;  %v400_v31 = vmax.f32 %v374_v26, 1e-24  ;;  %v401_v32 = vmax.f32 %v377_v27, 1e-24  ;;  %1279 = vst.msk [vmem:[%s2869_s11 + $0x18] sm:$0xff] %vm341_vm0, %v425_v25 }
  0xc8   : > { %v2408_v2 = vpop.eup %2407  ;;  %v426_v33 = vmul.f32 %v2406_v30, %v2772_v8 }
  0xc9   : > { %2417 = vrsqrt.f32 %v400_v31  ;;  %v427_v6 = vmul.f32 %v2408_v2, %v2775_v9 }
  0xca   : > { %2419 = vrsqrt.f32 %v401_v32  ;;  %2091 = vmatmul.mubr.msk.f32.gmra.mrb[2].mxu0 %vm341_vm0, %v425_v25  ;;  %1280 = vst.msk [vmem:[%s2869_s11 + $0x20] sm:$0xff] %vm341_vm0, %v426_v33  ;;  %v380_v36 = vpop.xlane.xlu0 %379  ;;  %v383_v37 = vpop.xlane.xlu1 %382 }
  0xcb   : > { %v2410_v38 = vpop.eup %2409  ;;  %2093 = vmatprep.mubr.msk.f32.mxu0 %vm341_vm0, %v426_v33  ;;  %1281 = vst.msk [vmem:[%s2869_s11 + $0x28] sm:$0xff] %vm341_vm0, %v427_v6  ;;  %v402_v39 = vmax.f32 %v380_v36, 1e-24  ;;  %v403_v42 = vmax.f32 %v383_v37, 1e-24 }
  0xcc   : > { %v2412_v8 = vpop.eup %2411  ;;  %v428_v43 = vmul.f32 %v2410_v38, %v2786_v16 }
  0xcd   : > { %2421 = vrsqrt.f32 %v402_v39  ;;  %v429_v9 = vmul.f32 %v2412_v8, %v2789_v17 }
  0xce   : > { %2094 = vmatmul.mubr.msk.f32.gmra.mrb[4].mxu0 %vm341_vm0, %v427_v6  ;;  %2423 = vrsqrt.f32 %v403_v42  ;;  %1282 = vst.msk [vmem:[%s2869_s11 + $0x30] sm:$0xff] %vm341_vm0, %v428_v43  ;;  %v386_v44 = vpop.xlane.xlu0 %385  ;;  %v389_v45 = vpop.xlane.xlu1 %388 }
  0xcf   : > { %v2414_v46 = vpop.eup %2413  ;;  %2096 = vmatprep.mubr.msk.f32.mxu0 %vm341_vm0, %v428_v43  ;;  %1283 = vst.msk [vmem:[%s2869_s11 + $0x38] sm:$0xff] %vm341_vm0, %v429_v9  ;;  %v404_v47 = vmax.f32 %v386_v44, 1e-24  ;;  %v405_v16 = vmax.f32 %v389_v45, 1e-24 }
  0xd0   : > { %v2416_v48 = vpop.eup %2415  ;;  %v430_v17 = vmul.f32 %v2414_v46, %v2798_v22 }
  0xd1   : > { %v431_v49 = vmul.f32 %v2416_v48, %v2801_v23  ;;  %2425 = vrsqrt.f32 %v404_v47 }
  0xd2   : > { %2097 = vmatmul.mubr.msk.f32.gmra.mrb[6].mxu0 %vm341_vm0, %v429_v9  ;;  %1284 = vst.msk [vmem:[%s2869_s11 + $0x40] sm:$0xff] %vm341_vm0, %v430_v17  ;;  %2427 = vrsqrt.f32 %v405_v16 }
  0xd3   : > { %v2418_v50 = vpop.eup %2417  ;;  %2099 = vmatprep.mubr.msk.f32.mxu0 %vm341_vm0, %v430_v17  ;;  %1285 = vst.msk [vmem:[%s2869_s11 + $0x48] sm:$0xff] %vm341_vm0, %v431_v49 }
  0xd4   : > { %v2420_v51 = vpop.eup %2419  ;;  %v432_v52 = vmul.f32 %v2418_v50, %v2810_v28 }
  0xd5   : > { %v433_v22 = vmul.f32 %v2420_v51, %v2813_v29 }
  0xd6   : > { %2100 = vmatmul.mubr.msk.f32.gmra.mrb[8].mxu0 %vm341_vm0, %v431_v49  ;;  %1286 = vst.msk [vmem:[%s2869_s11 + $0x50] sm:$0xff] %vm341_vm0, %v432_v52 }
  0xd7   : > { %v2422_v23 = vpop.eup %2421  ;;  %2102 = vmatprep.mubr.msk.f32.mxu0 %vm341_vm0, %v432_v52  ;;  %1287 = vst.msk [vmem:[%s2869_s11 + $0x58] sm:$0xff] %vm341_vm0, %v433_v22 }
  0xd8   : > { %v2424_v53 = vpop.eup %2423  ;;  %v434_v54 = vmul.f32 %v2422_v23, %v2822_v34 }
  0xd9   : > { %v435_v55 = vmul.f32 %v2424_v53, %v2825_v35 }
  0xda   : > { %2103 = vmatmul.mubr.msk.f32.gmra.mrb[10].mxu0 %vm341_vm0, %v433_v22  ;;  %1288 = vst.msk [vmem:[%s2869_s11 + $0x60] sm:$0xff] %vm341_vm0, %v434_v54 }
  0xdb   : > { %v2426_v28 = vpop.eup %2425  ;;  %2105 = vmatprep.mubr.msk.f32.mxu0 %vm341_vm0, %v434_v54  ;;  %1289 = vst.msk [vmem:[%s2869_s11 + $0x68] sm:$0xff] %vm341_vm0, %v435_v55 }
  0xdc   : > { %v2428_v29 = vpop.eup %2427  ;;  %v436_v56 = vmul.f32 %v2426_v28, %v2834_v40 }
  0xdd   : > { %v437_v57 = vmul.f32 %v2428_v29, %v2837_v41 }
  0xde   : > { %2106 = vmatmul.mubr.msk.f32.gmra.mrb[12].mxu0 %vm341_vm0, %v435_v55  ;;  %1290 = vst.msk [vmem:[%s2869_s11 + $0x70] sm:$0xff] %vm341_vm0, %v436_v56 }
  0xdf   : > { %2108 = vmatprep.mubr.msk.f32.mxu0 %vm341_vm0, %v436_v56  ;;  %1291 = vst.msk [vmem:[%s2869_s11 + $0x78] sm:$0xff] %vm341_vm0, %v437_v57 }
  0xe2   : > { %2109 = vmatmul.mubr.msk.f32.gmra.mrb[14].mxu0 %vm341_vm0, %v437_v57 }
 0x199   : > { %v2089_v34 = vpop.f32.mrb[0].mxu0 }
 0x19a   : > { %1261 = vst [vmem:[%s2933_s12 + $0x8] sm:$0xff] %v2089_v34  ;;  %639 = vmax.xlane.f32.xlu0 %v2089_v34  ;;  %v556_v35 = vpop.f32.mrb[1].mxu0 }
 0x19b   : > { %1260 = vst [vmem:[%s2933_s12] sm:$0xff] %v556_v35 }
 0x19d   : > { %v2937_v40 = vpop.f32.mrb[2].mxu0 }
 0x19e   : > { %1263 = vst [vmem:[%s2933_s12 + $0x18] sm:$0xff] %v2937_v40  ;;  %637 = vmax.xlane.f32.xlu0 %v556_v35  ;;  %v2941_v41 = vpop.f32.mrb[3].mxu0 }
 0x19f   : > { %1262 = vst [vmem:[%s2933_s12 + $0x10] sm:$0xff] %v2941_v41 }
 0x1a1   : > { %v2945_v58 = vpop.f32.mrb[4].mxu0 }
 0x1a2   : > { %1265 = vst [vmem:[%s2933_s12 + $0x28] sm:$0xff] %v2945_v58  ;;  %v2949_v59 = vpop.f32.mrb[5].mxu0 }
 0x1a3   : > { %1264 = vst [vmem:[%s2933_s12 + $0x20] sm:$0xff] %v2949_v59 }
 0x1a5   : > { %v2098_v60 = vpop.f32.mrb[6].mxu0 }
 0x1a6   : > { %1267 = vst [vmem:[%s2933_s12 + $0x38] sm:$0xff] %v2098_v60  ;;  %651 = vmax.xlane.f32.xlu1 %v2098_v60  ;;  %v586_v61 = vpop.f32.mrb[7].mxu0 }
 0x1a7   : > { %1266 = vst [vmem:[%s2933_s12 + $0x30] sm:$0xff] %v586_v61  ;;  %649 = vmax.xlane.f32.xlu0 %v586_v61 }
 0x1a9   : > { %v2101_v62 = vpop.f32.mrb[8].mxu0 }
 0x1aa   : > { %1269 = vst [vmem:[%s2933_s12 + $0x48] sm:$0xff] %v2101_v62  ;;  %655 = vmax.xlane.f32.xlu1 %v2101_v62  ;;  %v596_v63 = vpop.f32.mrb[9].mxu0 }
 0x1ab   : > { %1268 = vst [vmem:[%s2933_s12 + $0x40] sm:$0xff] %v596_v63  ;;  %653 = vmax.xlane.f32.xlu0 %v596_v63 }
 0x1ad   : > { %v2104_v3 = vpop.f32.mrb[10].mxu0 }
 0x1ae   : > { %1271 = vst [vmem:[%s2933_s12 + $0x58] sm:$0xff] %v2104_v3  ;;  %659 = vmax.xlane.f32.xlu1 %v2104_v3  ;;  %v2958_v4 = vpop.f32.mrb[11].mxu0 }
 0x1af   : > { %1270 = vst [vmem:[%s2933_s12 + $0x50] sm:$0xff] %v2958_v4  ;;  %641 = vmax.xlane.f32.xlu0 %v2941_v41 }
 0x1b1   : > { %v2963_v5 = vpop.f32.mrb[12].mxu0 }
 0x1b2   : > { %657 = vmax.xlane.f32.xlu1 %v2958_v4  ;;  %1273 = vst [vmem:[%s2933_s12 + $0x68] sm:$0xff] %v2963_v5  ;;  %v2968_v7 = vpop.f32.mrb[13].mxu0 }
 0x1b3   : > { %643 = vmax.xlane.f32.xlu0 %v2937_v40  ;;  %1272 = vst [vmem:[%s2933_s12 + $0x60] sm:$0xff] %v2968_v7 }
 0x1b5   : > { %v2973_v10 = vpop.f32.mrb[14].mxu0 }
 0x1b6   : > { %663 = vmax.xlane.f32.xlu1 %v2963_v5  ;;  %1275 = vst [vmem:[%s2933_s12 + $0x78] sm:$0xff] %v2973_v10  ;;  %v2978_v11 = vpop.f32.mrb[15].mxu0 }
 0x1b7   : > { %645 = vmax.xlane.f32.xlu0 %v2949_v59  ;;  %1274 = vst [vmem:[%s2933_s12 + $0x70] sm:$0xff] %v2978_v11 }
 0x1ba   : > { %661 = vmax.xlane.f32.xlu1 %v2968_v7 }
 0x1bb   : > { %647 = vmax.xlane.f32.xlu0 %v2945_v58 }
 0x1be   : > { %665 = vmax.xlane.f32.xlu1 %v2978_v11 }
 0x1c2   : > { %667 = vmax.xlane.f32.xlu1 %v2973_v10 }
 0x227   : > { %v640_v14 = vpop.xlane.xlu0 %639 }
 0x228   : > { %vm670_vm1 = vcmp.eq.f32.partialorder %v2089_v34, %v640_v14 }
 0x229   : > { %v2991_v15 = vsel %vm670_vm1, %v2988_v13, 128 }
 0x22a   : > { %v716_v18 = vshra.s32 %v2991_v15, 16 }
 0x22b   : > { %v638_v19 = vpop.xlane.xlu0 %637 }
 0x22c   : > { %vm669_vm2 = vcmp.eq.f32.partialorder %v556_v35, %v638_v19  ;;  %v2994_v20 = vcvt.s32.f32 %v716_v18 }
 0x22d   : > { %v2997_v21 = vsel %vm669_vm2, %v2988_v13, 128 }
 0x22e   : > { %719 = vmin.xlane.f32.xlu0 %v2994_v20  ;;  %v702_v24 = vshra.s32 %v2997_v21, 16 }
 0x230   : > { %v3001_v0 = vcvt.s32.f32 %v702_v24  ;;  %v1035_v24 = vld [vmem:[%s3706_s1] sm:$0xff] }
 0x232   : > { %705 = vmin.xlane.f32.xlu0 %v3001_v0 }
 0x233   : > { %v652_v1 = vpop.xlane.xlu1 %651 }
 0x234   : > { %vm676_vm3 = vcmp.eq.f32.partialorder %v2098_v60, %v652_v1  ;;  %v650_v25 = vpop.xlane.xlu0 %649  ;;  %v1037_v1 = vld [vmem:[%s3706_s1 + $0x10] sm:$0xff] }
 0x235   : > { %v3005_v26 = vsel %vm676_vm3, %v2988_v13, 128  ;;  %vm675_vm4 = vcmp.eq.f32.partialorder %v586_v61, %v650_v25 }
 0x236   : > { %v3008_v27 = vsel %vm675_vm4, %v2988_v13, 128  ;;  %v800_v30 = vshra.s32 %v3005_v26, 16 }
 0x237   : > { %v656_v31 = vpop.xlane.xlu1 %655  ;;  %v786_v32 = vshra.s32 %v3008_v27, 16 }
 0x238   : > { %vm678_vm5 = vcmp.eq.f32.partialorder %v2101_v62, %v656_v31  ;;  %v654_v2 = vpop.xlane.xlu0 %653  ;;  %v3012_v33 = vcvt.s32.f32 %v800_v30  ;;  %v1038_v30 = vld [vmem:[%s3706_s1 + $0x18] sm:$0xff] }
 0x239   : > { %v3015_v6 = vsel %vm678_vm5, %v2988_v13, 128  ;;  %vm677_vm6 = vcmp.eq.f32.partialorder %v596_v63, %v654_v2  ;;  %v3017_v36 = vcvt.s32.f32 %v786_v32  ;;  %v2179_v31 = vpack.c.bf16 %v1038_v30, %v1037_v1  ;;  %v1039_v32 = vld [vmem:[%s3706_s1 + $0x20] sm:$0xff]  ;;  %v1040_v2 = vld [vmem:[%s3706_s1 + $0x28] sm:$0xff] }
 0x23a   : > { %v3020_v37 = vsel %vm677_vm6, %v2988_v13, 128  ;;  %803 = vmin.xlane.f32.xlu1 %v3012_v33  ;;  %v828_v38 = vshra.s32 %v3015_v6, 16 }
 0x23b   : > { %v660_v39 = vpop.xlane.xlu1 %659  ;;  %789 = vmin.xlane.f32.xlu0 %v3017_v36  ;;  %v814_v42 = vshra.s32 %v3020_v37, 16 }
 0x23c   : > { %vm680_vm7 = vcmp.eq.f32.partialorder %v2104_v3, %v660_v39  ;;  %v642_v8 = vpop.xlane.xlu0 %641  ;;  %v3026_v43 = vcvt.s32.f32 %v828_v38  ;;  %v2183_v38 = vpack.c.bf16 %v1040_v2, %v1039_v32  ;;  %v1041_v39 = vld [vmem:[%s3706_s1 + $0x30] sm:$0xff] }
 0x23d   : > { %v3029_v9 = vsel %vm680_vm7, %v2988_v13, 128  ;;  %vm671_vm8 = vcmp.eq.f32.partialorder %v2941_v41, %v642_v8  ;;  %v3032_v44 = vcvt.s32.f32 %v814_v42  ;;  %v1042_v42 = vld [vmem:[%s3706_s1 + $0x38] sm:$0xff] }
 0x23e   : > { %v3035_v45 = vsel %vm671_vm8, %v2988_v13, 128  ;;  %831 = vmin.xlane.f32.xlu1 %v3026_v43  ;;  %v856_v46 = vshra.s32 %v3029_v9, 16  ;;  %v2187_v8 = vpack.c.bf16 %v1042_v42, %v1041_v39 }
 0x23f   : > { %v658_v47 = vpop.xlane.xlu1 %657  ;;  %817 = vmin.xlane.f32.xlu0 %v3032_v44  ;;  %v730_v16 = vshra.s32 %v3035_v45, 16  ;;  %v729_v1 = vand.u32 65535, %v3035_v45 }
 0x240   : > { %vm679_vm9 = vcmp.eq.f32.partialorder %v2958_v4, %v658_v47  ;;  %v644_v48 = vpop.xlane.xlu0 %643  ;;  %v3042_v17 = vcvt.s32.f32 %v856_v46  ;;  %v1043_v46 = vld [vmem:[%s3706_s1 + $0x40] sm:$0xff]  ;;  %v1044_v47 = vld [vmem:[%s3706_s1 + $0x48] sm:$0xff] }
 0x241   : > { %v3045_v49 = vsel %vm679_vm9, %v2988_v13, 128  ;;  %vm672_vm10 = vcmp.eq.f32.partialorder %v2937_v40, %v644_v48  ;;  %v3048_v50 = vcvt.s32.f32 %v730_v16  ;;  %v2191_v16 = vpack.c.bf16 %v1044_v47, %v1043_v46  ;;  %v1045_v48 = vld [vmem:[%s3706_s1 + $0x50] sm:$0xff] }
 0x242   : > { %v3051_v51 = vsel %vm672_vm10, %v2988_v13, 128  ;;  %859 = vmin.xlane.f32.xlu1 %v3042_v17  ;;  %v842_v52 = vshra.s32 %v3045_v49, 16  ;;  %v841_v32 = vand.u32 65535, %v3045_v49  ;;  %v731_v49 = vcvt.s32.f32 %v729_v1 }
 0x243   : > { %v664_v22 = vpop.xlane.xlu1 %663  ;;  %733 = vmin.xlane.f32.xlu0 %v3048_v50  ;;  %v744_v23 = vshra.s32 %v3051_v51, 16 }
 0x244   : > { %vm682_vm11 = vcmp.eq.f32.partialorder %v2963_v5, %v664_v22  ;;  %v646_v53 = vpop.xlane.xlu0 %645  ;;  %v3058_v54 = vcvt.s32.f32 %v842_v52  ;;  %v1046_v52 = vld [vmem:[%s3706_s1 + $0x58] sm:$0xff] }
 0x245   : > { %v3061_v55 = vsel %vm682_vm11, %v2988_v13, 128  ;;  %vm673_vm12 = vcmp.eq.f32.partialorder %v2949_v59, %v646_v53  ;;  %v3064_v28 = vcvt.s32.f32 %v744_v23  ;;  %v2195_v22 = vpack.c.bf16 %v1046_v52, %v1045_v48 }
 0x246   : > { %v3067_v29 = vsel %vm673_vm12, %v2988_v13, 128  ;;  %845 = vmin.xlane.f32.xlu1 %v3058_v54  ;;  %v884_v56 = vshra.s32 %v3061_v55, 16  ;;  %v715_v23 = vand.u32 65535, %v2991_v15  ;;  %v701_v53 = vand.u32 65535, %v2997_v21 }
 0x247   : > { %v662_v57 = vpop.xlane.xlu1 %661  ;;  %747 = vmin.xlane.f32.xlu0 %v3064_v28  ;;  %v758_v34 = vshra.s32 %v3067_v29, 16  ;;  %v799_v15 = vand.u32 65535, %v3005_v26  ;;  %v785_v21 = vand.u32 65535, %v3008_v27  ;;  %v855_v27 = vand.u32 65535, %v3029_v9 }
 0x248   : > { %vm681_vm13 = vcmp.eq.f32.partialorder %v2968_v7, %v662_v57  ;;  %v648_v35 = vpop.xlane.xlu0 %647  ;;  %v3074_v40 = vcvt.s32.f32 %v884_v56  ;;  %v717_v57 = vcvt.s32.f32 %v715_v23  ;;  %v883_v47 = vand.u32 65535, %v3061_v55 }
 0x249   : > { %v3077_v41 = vsel %vm681_vm13, %v2988_v13, 128  ;;  %vm674_vm14 = vcmp.eq.f32.partialorder %v2945_v58, %v648_v35  ;;  %v3080_v59 = vcvt.s32.f32 %v758_v34  ;;  %v857_v45 = vcvt.s32.f32 %v855_v27 }
 0x24a   : > { %v3083_v60 = vsel %vm674_vm14, %v2988_v13, 128  ;;  %887 = vmin.xlane.f32.xlu1 %v3074_v40  ;;  %v870_v61 = vshra.s32 %v3077_v41, 16  ;;  %v757_v48 = vand.u32 65535, %v3067_v29  ;;  %v885_v29 = vcvt.s32.f32 %v883_v47 }
 0x24b   : > { %v666_v62 = vpop.xlane.xlu1 %665  ;;  %761 = vmin.xlane.f32.xlu0 %v3080_v59  ;;  %v772_v63 = vshra.s32 %v3083_v60, 16 }
 0x24c   : > { %vm683_vm15 = vcmp.eq.f32.partialorder %v2978_v11, %v666_v62  ;;  %v3090_v3 = vcvt.s32.f32 %v870_v61  ;;  %v703_v61 = vcvt.s32.f32 %v701_v53  ;;  %v771_v53 = vand.u32 65535, %v3083_v60 }
 0x24d   : > { %v3093_v58 = vsel %vm683_vm15, %v2988_v13, 128  ;;  %v3095_v4 = vcvt.s32.f32 %v772_v63  ;;  %v827_v63 = vand.u32 65535, %v3015_v6 }
 0x24e   : > { %873 = vmin.xlane.f32.xlu1 %v3090_v3  ;;  %v898_v5 = vshra.s32 %v3093_v58, 16  ;;  %v773_v60 = vcvt.s32.f32 %v771_v53 }
 0x24f   : > { %v668_v7 = vpop.xlane.xlu1 %667  ;;  %775 = vmin.xlane.f32.xlu0 %v3095_v4 }
 0x250   : > { %vm684_vm1 = vcmp.eq.f32.partialorder %v2973_v10, %v668_v7  ;;  %v3101_v14 = vcvt.s32.f32 %v898_v5  ;;  %v1036_v10 = vld [vmem:[%s3706_s1 + $0x8] sm:$0xff]  ;;  %v801_v7 = vcvt.s32.f32 %v799_v15 }
 0x251   : > { %v3104_v11 = vsel %vm684_vm1, %v2988_v13, 128  ;;  %v2175_v25 = vpack.c.bf16 %v1036_v10, %v1035_v24  ;;  %v787_v24 = vcvt.s32.f32 %v785_v21  ;;  %v829_v10 = vcvt.s32.f32 %v827_v63 }
 0x252   : > { %901 = vmin.xlane.f32.xlu1 %v3101_v14  ;;  %v912_v18 = vshra.s32 %v3104_v11, 16  ;;  %v911_v21 = vand.u32 65535, %v3104_v11  ;;  %v3241_v11 = vshrl.u32 %v635_v12, 7 }
 0x253   : > { %2176 = vmatprep.subr.bf16.mxu0 %v2175_v25  ;;  %2207 = vmatprep.subr.bf16.mxu1 %v2175_v25 }
 0x254   : > { %v3108_v19 = vcvt.s32.f32 %v912_v18  ;;  %2178 = vmatpush3.bf16.msra.mxu0 %v2175_v25  ;;  %2215 = vmatpush3.bf16.msra.mxu1 %v2175_v25 }
 0x255   : > { %2180 = vmatprep.subr.bf16.mxu0 %v2179_v31  ;;  %2208 = vmatprep.subr.bf16.mxu1 %v2179_v31 }
 0x256   : > { %915 = vmin.xlane.f32.xlu1 %v3108_v19 }
 0x258   : > { %2182 = vmatpush3.bf16.msra.mxu0 %v2179_v31  ;;  %2216 = vmatpush3.bf16.msra.mxu1 %v2179_v31 }
 0x259   : > { %2184 = vmatprep.subr.bf16.mxu0 %v2183_v38  ;;  %2209 = vmatprep.subr.bf16.mxu1 %v2183_v38 }
 0x25c   : > { %2186 = vmatpush3.bf16.msra.mxu0 %v2183_v38  ;;  %2217 = vmatpush3.bf16.msra.mxu1 %v2183_v38  ;;  %v1050_v38 = vld [vmem:[%s3706_s1 + $0x78] sm:$0xff] }
 0x25d   : > { %2188 = vmatprep.subr.bf16.mxu0 %v2187_v8  ;;  %2210 = vmatprep.subr.bf16.mxu1 %v2187_v8 }
 0x260   : > { %2190 = vmatpush3.bf16.msra.mxu0 %v2187_v8  ;;  %2218 = vmatpush3.bf16.msra.mxu1 %v2187_v8 }
 0x261   : > { %2192 = vmatprep.subr.bf16.mxu0 %v2191_v16  ;;  %2211 = vmatprep.subr.bf16.mxu1 %v2191_v16 }
 0x264   : > { %2194 = vmatpush3.bf16.msra.mxu0 %v2191_v16  ;;  %2219 = vmatpush3.bf16.msra.mxu1 %v2191_v16 }
 0x265   : > { %2196 = vmatprep.subr.bf16.mxu0 %v2195_v22  ;;  %2212 = vmatprep.subr.bf16.mxu1 %v2195_v22 }
 0x268   : > { %2198 = vmatpush3.bf16.msra.mxu0 %v2195_v22  ;;  %2220 = vmatpush3.bf16.msra.mxu1 %v2195_v22  ;;  %v869_v22 = vand.u32 65535, %v3077_v41  ;;  %v897_v41 = vand.u32 65535, %v3093_v58 }
 0x26a   : > { %v899_v58 = vcvt.s32.f32 %v897_v41 }
 0x2bb   : > { %v3149_v56 = vpop.xlane.xlu0 %719 }
 0x2bc   : > { %vm721_vm2 = vcmp.eq.f32.partialorder %v2994_v20, %v3149_v56  ;;  %v813_v20 = vand.u32 65535, %v3020_v37  ;;  %v1047_v37 = vld [vmem:[%s3706_s1 + $0x60] sm:$0xff] }
 0x2bd   : > { %v722_v34 = vsel %vm721_vm2, %v717_v57, inf }
 0x2be   : > { %723 = vmin.xlane.f32.xlu0 %v722_v34 }
 0x2bf   : > { %v3153_v35 = vpop.xlane.xlu0 %705 }
 0x2c0   : > { %vm707_vm3 = vcmp.eq.f32.partialorder %v3001_v0, %v3153_v35 }
 0x2c1   : > { %v708_v62 = vsel %vm707_vm3, %v703_v61, inf  ;;  %vm934_vm3 = vcmask 130112  }
 0x2c2   : > { %709 = vmin.xlane.f32.xlu0 %v708_v62  ;;  %v871_v62 = vcvt.s32.f32 %v869_v22 }
 0x2c7   : > { %v3160_v5 = vpop.xlane.xlu1 %803 }
 0x2c8   : > { %v3163_v18 = vpop.xlane.xlu0 %789  ;;  %vm805_vm4 = vcmp.eq.f32.partialorder %v3012_v33, %v3160_v5  ;;  %v1048_v33 = vld [vmem:[%s3706_s1 + $0x68] sm:$0xff]  ;;  %v810_v12 = vcvt.f32.s32 %v3160_v5 }
 0x2c9   : > { %v806_v0 = vsel %vm805_vm4, %v801_v7, inf  ;;  %vm791_vm5 = vcmp.eq.f32.partialorder %v3017_v36, %v3163_v18  ;;  %v815_v36 = vcvt.s32.f32 %v813_v20  ;;  %v2199_v9 = vpack.c.bf16 %v1048_v33, %v1047_v37 }
 0x2ca   : > { %807 = vmin.xlane.f32.xlu1 %v806_v0  ;;  %v792_v26 = vsel %vm791_vm5, %v787_v24, inf  ;;  %v726_v24 = vcvt.f32.s32 %v3149_v56  ;;  %v929_v0 = vadd.s32 4294967288, %v2988_v13 }
 0x2cb   : > { %v3170_v6 = vpop.xlane.xlu1 %831  ;;  %793 = vmin.xlane.f32.xlu0 %v792_v26  ;;  %2200 = vmatprep.subr.bf16.mxu0 %v2199_v9 }
 0x2cc   : > { %v3179_v25 = vpop.xlane.xlu0 %817  ;;  %vm833_vm6 = vcmp.eq.f32.partialorder %v3026_v43, %v3170_v6  ;;  %2202 = vmatpush3.bf16.msra.mxu0 %v2199_v9  ;;  %v1049_v43 = vld [vmem:[%s3706_s1 + $0x70] sm:$0xff]  ;;  %2213 = vmatprep.subr.bf16.mxu1 %v2199_v9  ;;  %v932_v37 = vsub.s32 %v929_v0, %v3241_v11 }
 0x2cd   : > { %v834_v30 = vsel %vm833_vm6, %v829_v10, inf  ;;  %vm819_vm7 = vcmp.eq.f32.partialorder %v3032_v44, %v3179_v25  ;;  %v743_v44 = vand.u32 65535, %v3051_v51  ;;  %v2203_v8 = vpack.c.bf16 %v1050_v38, %v1049_v43  ;;  %2221 = vmatpush3.bf16.msra.mxu1 %v2199_v9 }
 0x2ce   : > { %835 = vmin.xlane.f32.xlu1 %v834_v30  ;;  %v820_v31 = vsel %vm819_vm7, %v815_v36, inf  ;;  %v843_v51 = vcvt.s32.f32 %v841_v32  ;;  %v727_v10 = vshll.u32 %v726_v24, 16  ;;  %v2653_v32 = vmov 1.0  }
 0x2cf   : > { %v3186_v2 = vpop.xlane.xlu1 %859  ;;  %821 = vmin.xlane.f32.xlu0 %v820_v31  ;;  %2204 = vmatprep.subr.bf16.mxu0 %v2203_v8  ;;  %v745_v52 = vcvt.s32.f32 %v743_v44  ;;  %v838_v43 = vcvt.f32.s32 %v3170_v6  ;;  %v811_v44 = vshll.u32 %v810_v12, 16 }
 0x2d0   : > { %v3195_v39 = vpop.xlane.xlu0 %733  ;;  %vm861_vm8 = vcmp.eq.f32.partialorder %v3042_v17, %v3186_v2  ;;  %2206 = vmatpush3.bf16.msra.mxu0 %v2203_v8  ;;  %2214 = vmatprep.subr.bf16.mxu1 %v2203_v8 }
 0x2d1   : > { %v862_v42 = vsel %vm861_vm8, %v857_v45, inf  ;;  %vm735_vm9 = vcmp.eq.f32.partialorder %v3048_v50, %v3195_v39  ;;  %2222 = vmatpush3.bf16.msra.mxu1 %v2203_v8  ;;  %v824_v8 = vcvt.f32.s32 %v3179_v25  ;;  %v740_v47 = vcvt.f32.s32 %v3195_v39 }
 0x2d2   : > { %863 = vmin.xlane.f32.xlu1 %v862_v42  ;;  %v736_v46 = vsel %vm735_vm9, %v731_v49, inf  ;;  %v936_v39 = vadd.s32 4294967280, %v2988_v13 }
 0x2d3   : > { %v3202_v16 = vpop.xlane.xlu1 %845  ;;  %737 = vmin.xlane.f32.xlu0 %v736_v46 }
 0x2d4   : > { %v3205_v17 = vpop.xlane.xlu0 %747  ;;  %vm847_vm10 = vcmp.eq.f32.partialorder %v3058_v54, %v3202_v16  ;;  %v759_v54 = vcvt.s32.f32 %v757_v48  ;;  %v839_v48 = vshll.u32 %v838_v43, 16 }
 0x2d5   : > { %v848_v50 = vsel %vm847_vm10, %v843_v51, inf  ;;  %vm749_vm11 = vcmp.eq.f32.partialorder %v3064_v28, %v3205_v17  ;;  %v754_v6 = vcvt.f32.s32 %v3205_v17  ;;  %vm941_vm10 = vcmask 195712  }
 0x2d6   : > { %849 = vmin.xlane.f32.xlu1 %v848_v50  ;;  %v750_v55 = vsel %vm749_vm11, %v745_v52, inf  ;;  %v852_v52 = vcvt.f32.s32 %v3202_v16 }
 0x2d7   : > { %v3212_v23 = vpop.xlane.xlu1 %887  ;;  %751 = vmin.xlane.f32.xlu0 %v750_v55 }
 0x2d8   : > { %v3215_v57 = vpop.xlane.xlu0 %761  ;;  %vm889_vm12 = vcmp.eq.f32.partialorder %v3074_v40, %v3212_v23  ;;  %v894_v22 = vcvt.f32.s32 %v3212_v23  ;;  %v853_v17 = vshll.u32 %v852_v52, 16  ;;  %v992_v52 = vadd.s32 4294967216, %v2988_v13 }
 0x2d9   : > { %v890_v34 = vsel %vm889_vm12, %v885_v29, inf  ;;  %vm763_vm13 = vcmp.eq.f32.partialorder %v3080_v59, %v3215_v57  ;;  %v3268_v29 = vadd.s32 4294967240, %v2988_v13  ;;  %v768_v23 = vcvt.f32.s32 %v3215_v57 }
 0x2da   : > { %891 = vmin.xlane.f32.xlu1 %v890_v34  ;;  %v764_v28 = vsel %vm763_vm13, %v759_v54, inf  ;;  %v741_v34 = vshll.u32 %v740_v47, 16  ;;  %v943_v57 = vadd.s32 4294967272, %v2988_v13  ;;  %vm948_vm12 = vcmask 261312  }
 0x2db   : > { %v3222_v61 = vpop.xlane.xlu1 %873  ;;  %765 = vmin.xlane.f32.xlu0 %v764_v28 }
 0x2dc   : > { %v3224_v15 = vpop.xlane.xlu0 %775  ;;  %vm875_vm14 = vcmp.eq.f32.partialorder %v3090_v3, %v3222_v61  ;;  %v913_v3 = vcvt.s32.f32 %v911_v21  ;;  %v974_v21 = vsub.s32 %v3268_v29, %v3241_v11  ;;  %v880_v24 = vcvt.f32.s32 %v3222_v61 }
 0x2dd   : > { %v876_v40 = vsel %vm875_vm14, %v871_v62, inf  ;;  %vm777_vm15 = vcmp.eq.f32.partialorder %v3095_v4, %v3224_v15  ;;  %v3282_v62 = vadd.s32 4294967248, %v2988_v13  ;;  %v782_v0 = vcvt.f32.s32 %v3224_v15 }
 0x2de   : > { %877 = vmin.xlane.f32.xlu1 %v876_v40  ;;  %v778_v59 = vsel %vm777_vm15, %v773_v60, inf  ;;  %v755_v40 = vshll.u32 %v754_v6, 16  ;;  %v881_v12 = vshll.u32 %v880_v24, 16  ;;  %v3336_v6 = vadd.s32 4294967192, %v2988_v13 }
 0x2df   : > { %v3231_v63 = vpop.xlane.xlu1 %901  ;;  %779 = vmin.xlane.f32.xlu0 %v778_v59  ;;  %v3285_v59 = vshll.u32 %v894_v22, 16 }
 0x2e0   : > { %vm903_vm1 = vcmp.eq.f32.partialorder %v3101_v14, %v3231_v63  ;;  %v712_v14 = vcvt.f32.s32 %v3153_v35  ;;  %v796_v35 = vcvt.f32.s32 %v3163_v18  ;;  %v866_v18 = vcvt.f32.s32 %v3186_v2 }
 0x2e1   : > { %v904_v7 = vsel %vm903_vm1, %v899_v58, inf  ;;  %v825_v2 = vshll.u32 %v824_v8, 16  ;;  %v908_v43 = vcvt.f32.s32 %v3231_v63  ;;  %v957_v8 = vadd.s32 4294967256, %v2988_v13 }
 0x2e2   : > { %905 = vmin.xlane.f32.xlu1 %v904_v7  ;;  %v713_v1 = vshll.u32 %v712_v14, 16  ;;  %v797_v42 = vshll.u32 %v796_v35, 16  ;;  %v867_v16 = vshll.u32 %v866_v18, 16  ;;  %v769_v14 = vshll.u32 %v768_v23, 16 }
 0x2e3   : > { %v3235_v20 = vpop.xlane.xlu1 %915  ;;  %vm955_vm1 = vcmask 326912  }
 0x2e4   : > { %vm917_vm2 = vcmp.eq.f32.partialorder %v3108_v19, %v3235_v20  ;;  %v927_v19 = vsub.s32 %v2988_v13, %v3241_v11  ;;  %v922_v63 = vcvt.f32.s32 %v3235_v20 }
 0x2e5   : > { %v918_v4 = vsel %vm917_vm2, %v913_v3, inf  ;;  %v939_v3 = vsub.s32 %v936_v39, %v3241_v11 }
 0x2e6   : > { %919 = vmin.xlane.f32.xlu1 %v918_v4  ;;  %v923_v23 = vshll.u32 %v922_v63, 16 }
 0x34b   : > { %v724_v26 = vpop.xlane.xlu0 %723 }
 0x34c   : > { %v725_v27 = vcvt.f32.s32 %v724_v26  ;;  %v3296_v26 = vadd.s32 4294967224, %v2988_v13 }
 0x34e   : > { %v728_v36 = vadd.s32 %v727_v10, %v725_v27  ;;  %v3302_v27 = vadd.s32 4294967232, %v2988_v13  ;;  %v967_v10 = vsub.s32 %v3282_v62, %v3241_v11 }
 0x34f   : > { %v710_v33 = vpop.xlane.xlu0 %709 }
 0x350   : > { %v711_v9 = vcvt.f32.s32 %v710_v33  ;;  %v933_v30 = vrot.slane %v728_v36, %v932_v37  ;;  %vm1052_vm5 = vcmp.eq.s32.totalorder %v2988_v13, %v728_v36  ;;  %v950_v36 = vadd.s32 4294967264, %v2988_v13 }
 0x352   : > { %v714_v56 = vadd.s32 %v713_v1, %v711_v9  ;;  %v946_v9 = vsub.s32 %v943_v57, %v3241_v11 }
 0x354   : > { %v928_v31 = vrot.slane %v714_v56, %v927_v19  ;;  %vm1051_vm4 = vcmp.eq.s32.totalorder %v2988_v13, %v714_v56 }
 0x355   : > { %2143 = vmatprep.mubr.msk.f32.mxu0 %vm1051_vm4, %v2653_v32  ;;  %vm969_vm4 = vcmask 458112  }
 0x356   : > { %v3253_v45 = vsel %vm934_vm3, %v933_v30, %v928_v31  ;;  %2144 = vmatmul.mubr.msk.f32.vlgmr.msra.gmra.mrb[16].mxu0 %vm1052_vm5, %v2653_v32  ;;  %v783_v30 = vshll.u32 %v782_v0, 16  ;;  %v988_v31 = vsub.s32 %v3296_v26, %v3241_v11  ;;  %vm962_vm3 = vcmask 392512  }
 0x357   : > { %v808_v38 = vpop.xlane.xlu1 %807 }
 0x358   : > { %v809_v5 = vcvt.f32.s32 %v808_v38  ;;  %v794_v49 = vpop.xlane.xlu0 %793 }
 0x359   : > { %v795_v46 = vcvt.f32.s32 %v794_v49  ;;  %v953_v49 = vsub.s32 %v950_v36, %v3241_v11 }
 0x35a   : > { %v3260_v51 = vadd.s32 %v811_v44, %v809_v5 }
 0x35b   : > { %v836_v50 = vpop.xlane.xlu1 %835  ;;  %v3263_v55 = vadd.s32 %v797_v42, %v795_v46 }
 0x35c   : > { %v837_v25 = vcvt.f32.s32 %v836_v50  ;;  %v822_v53 = vpop.xlane.xlu0 %821  ;;  %vm1058_vm7 = vcmp.eq.s32.totalorder %v2988_v13, %v3260_v51 }
 0x35d   : > { %v823_v54 = vcvt.f32.s32 %v822_v53  ;;  %vm1057_vm6 = vcmp.eq.s32.totalorder %v2988_v13, %v3263_v55  ;;  %v909_v53 = vshll.u32 %v908_v43, 16 }
 0x35e   : > { %v3273_v28 = vadd.s32 %v839_v48, %v837_v25  ;;  %2152 = vmatprep.mubr.msk.f32.mxu1 %vm1057_vm6, %v2653_v32  ;;  %v999_v48 = vadd.s32 4294967208, %v2988_v13  ;;  %v1006_v25 = vadd.s32 4294967200, %v2988_v13 }
 0x35f   : > { %v3279_v41 = vadd.s32 %v825_v2, %v823_v54  ;;  %v864_v60 = vpop.xlane.xlu1 %863  ;;  %2153 = vmatmul.mubr.msk.f32.vlgmr.msra.gmra.mrb[0].mxu1 %vm1058_vm7, %v2653_v32  ;;  %v960_v54 = vsub.s32 %v957_v8, %v3241_v11 }
 0x360   : > { %v865_v58 = vcvt.f32.s32 %v864_v60  ;;  %v738_v7 = vpop.xlane.xlu0 %737  ;;  %vm1060_vm9 = vcmp.eq.s32.totalorder %v2988_v13, %v3273_v28  ;;  %v1002_v60 = vsub.s32 %v999_v48, %v3241_v11  ;;  %v989_v29 = vrot.slane %v3273_v28, %v988_v31 }
 0x361   : > { %v739_v4 = vcvt.f32.s32 %v738_v7  ;;  %vm1059_vm8 = vcmp.eq.s32.totalorder %v2988_v13, %v3279_v41  ;;  %v1016_v7 = vsub.s32 %v3336_v6, %v3241_v11 }
 0x362   : > { %2155 = vmatprep.mubr.msk.f32.mxu1 %vm1059_vm8, %v2653_v32  ;;  %v3307_v61 = vadd.s32 %v867_v16, %v865_v58  ;;  %vm976_vm8 = vcmask 523712  }
 0x363   : > { %v742_v37 = vadd.s32 %v741_v34, %v739_v4  ;;  %v850_v33 = vpop.xlane.xlu1 %849  ;;  %2156 = vmatmul.mubr.msk.f32.gmra.mrb[2].mxu1 %vm1060_vm9, %v2653_v32  ;;  %v1009_v4 = vsub.s32 %v1006_v25, %v3241_v11  ;;  %vm983_vm9 = vcmask 589312  }
 0x364   : > { %v851_v15 = vcvt.f32.s32 %v850_v33  ;;  %v752_v1 = vpop.xlane.xlu0 %751  ;;  %vm1062_vm14 = vcmp.eq.s32.totalorder %v2988_v13, %v3307_v61  ;;  %v975_v33 = vrot.slane %v3260_v51, %v974_v21 }
 0x365   : > { %v940_v19 = vrot.slane %v742_v37, %v939_v3  ;;  %v753_v56 = vcvt.f32.s32 %v752_v1  ;;  %vm1053_vm11 = vcmp.eq.s32.totalorder %v2988_v13, %v742_v37  ;;  %v1027_v1 = vadd.s32 4294967176, %v2988_v13 }
 0x366   : > { %v3314_v35 = vadd.s32 %v853_v17, %v851_v15  ;;  %2146 = vmatprep.mubr.msk.f32.mxu0 %vm1053_vm11, %v2653_v32 }
 0x367   : > { %v942_v38 = vsel %vm941_vm10, %v940_v19, %v3253_v45  ;;  %v756_v44 = vadd.s32 %v755_v40, %v753_v56  ;;  %v892_v5 = vpop.xlane.xlu1 %891  ;;  %v981_v45 = vsub.s32 %v3302_v27, %v3241_v11  ;;  %v995_v40 = vsub.s32 %v992_v52, %v3241_v11 }
 0x368   : > { %v766_v42 = vpop.xlane.xlu0 %765  ;;  %vm1061_vm13 = vcmp.eq.s32.totalorder %v2988_v13, %v3314_v35  ;;  %v893_v18 = vcvt.f32.s32 %v892_v5  ;;  %v968_v27 = vrot.slane %v3263_v55, %v967_v10  ;;  %vm990_vm10 = vcmask 654912  }
 0x369   : > { %v947_v46 = vrot.slane %v756_v44, %v946_v9  ;;  %v767_v47 = vcvt.f32.s32 %v766_v42  ;;  %2158 = vmatprep.mubr.msk.f32.mxu1 %vm1061_vm13, %v2653_v32  ;;  %vm1054_vm15 = vcmp.eq.s32.totalorder %v2988_v13, %v756_v44  ;;  %v982_v55 = vrot.slane %v3279_v41, %v981_v45 }
 0x36a   : > { %2147 = vmatmul.mubr.msk.f32.gmra.mrb[18].mxu0 %vm1054_vm15, %v2653_v32  ;;  %2159 = vmatmul.mubr.msk.f32.gmra.mrb[4].mxu1 %vm1062_vm14, %v2653_v32  ;;  %v896_v16 = vadd.s32 %v3285_v59, %v893_v18  ;;  %v996_v21 = vrot.slane %v3314_v35, %v995_v40  ;;  %vm1004_vm13 = vcmask 786112   ;;  %v1003_v56 = vrot.slane %v3307_v61, %v1002_v60 }
 0x36b   : > { %v949_v50 = vsel %vm948_vm12, %v947_v46, %v942_v38  ;;  %v770_v22 = vadd.s32 %v769_v14, %v767_v47  ;;  %v878_v20 = vpop.xlane.xlu1 %877  ;;  %v1020_v14 = vadd.s32 4294967184, %v2988_v13  ;;  %vm997_vm12 = vcmask 720512  }
 0x36c   : > { %v879_v2 = vcvt.f32.s32 %v878_v20  ;;  %v780_v39 = vpop.xlane.xlu0 %779  ;;  %vm1064_vm7 = vcmp.eq.s32.totalorder %v2988_v13, %v896_v16  ;;  %vm1011_vm14 = vcmask 851712   ;;  %v1030_v26 = vsub.s32 %v1027_v1, %v3241_v11 }
 0x36d   : > { %v954_v34 = vrot.slane %v770_v22, %v953_v49  ;;  %v781_v17 = vcvt.f32.s32 %v780_v39  ;;  %vm1055_vm2 = vcmp.eq.s32.totalorder %v2988_v13, %v770_v22  ;;  %v1023_v51 = vsub.s32 %v1020_v14, %v3241_v11 }
 0x36e   : > { %v882_v58 = vadd.s32 %v881_v12, %v879_v2  ;;  %2149 = vmatprep.mubr.msk.f32.mxu0 %vm1055_vm2, %v2653_v32  ;;  %vm1018_vm15 = vcmask 917312   ;;  %v1017_v31 = vrot.slane %v896_v16, %v1016_v7  ;;  %vm1025_vm2 = vcmask 982912  }
 0x36f   : > { %v956_v3 = vsel %vm955_vm1, %v954_v34, %v949_v50  ;;  %v784_v57 = vadd.s32 %v783_v30, %v781_v17  ;;  %v906_v59 = vpop.xlane.xlu1 %905 }
 0x370   : > { %v907_v24 = vcvt.f32.s32 %v906_v59  ;;  %vm1063_vm5 = vcmp.eq.s32.totalorder %v2988_v13, %v882_v58  ;;  %v1010_v28 = vrot.slane %v882_v58, %v1009_v4 }
 0x371   : > { %v961_v0 = vrot.slane %v784_v57, %v960_v54  ;;  %2161 = vmatprep.mubr.msk.f32.mxu1 %vm1063_vm5, %v2653_v32  ;;  %vm1056_vm6 = vcmp.eq.s32.totalorder %v2988_v13, %v784_v57 }
 0x372   : > { %v910_v37 = vadd.s32 %v909_v53, %v907_v24  ;;  %2150 = vmatmul.mubr.msk.f32.gmra.mrb[20].mxu0 %vm1056_vm6, %v2653_v32  ;;  %2162 = vmatmul.mubr.msk.f32.gmra.mrb[6].mxu1 %vm1064_vm7, %v2653_v32 }
 0x373   : > { %v963_v15 = vsel %vm962_vm3, %v961_v0, %v956_v3  ;;  %v920_v62 = vpop.xlane.xlu1 %919  ;;  %vm1032_vm3 = vcmask 1048512  }
 0x374   : > { %v970_v10 = vsel %vm969_vm4, %v968_v27, %v963_v15  ;;  %v921_v36 = vcvt.f32.s32 %v920_v62  ;;  %vm1065_vm11 = vcmp.eq.s32.totalorder %v2988_v13, %v910_v37  ;;  %v1024_v61 = vrot.slane %v910_v37, %v1023_v51 }
 0x375   : > { %v977_v19 = vsel %vm976_vm8, %v975_v33, %v970_v10  ;;  %2164 = vmatprep.mubr.msk.f32.mxu1 %vm1065_vm11, %v2653_v32 }
 0x376   : > { %v984_v41 = vsel %vm983_vm9, %v982_v55, %v977_v19  ;;  %v924_v9 = vadd.s32 %v923_v23, %v921_v36 }
 0x377   : > { %v991_v12 = vsel %vm990_vm10, %v989_v29, %v984_v41 }
 0x378   : > { %v998_v30 = vsel %vm997_vm12, %v996_v21, %v991_v12  ;;  %vm1066_vm1 = vcmp.eq.s32.totalorder %v2988_v13, %v924_v9  ;;  %v1031_v44 = vrot.slane %v924_v9, %v1030_v26 }
 0x379   : > { %v1005_v35 = vsel %vm1004_vm13, %v1003_v56, %v998_v30  ;;  %2165 = vmatmul.mubr.msk.f32.gmra.mrb[8].mxu1 %vm1066_vm1, %v2653_v32 }
 0x37a   : > { %v1012_v43 = vsel %vm1011_vm14, %v1010_v28, %v1005_v35 }
 0x37b   : > { %v1019_v38 = vsel %vm1018_vm15, %v1017_v31, %v1012_v43 }
 0x37c   : > { %v1026_v5 = vsel %vm1025_vm2, %v1024_v61, %v1019_v38 }
 0x37d   : > { %v1033_v11 = vsel %vm1032_vm3, %v1031_v44, %v1026_v5 }
 0x37e   : > { %1034 = vst [vmem:[%s3696_s15] sm:$0x1] %v1033_v11 }
 0x429   : > { %v2145_v49 = vpop.f32.mrb[16].mxu0 }
 0x42a   : > { %1245 = vst.msk [vmem:[%s3385_s16 + $0x8] sm:$0xff] %vm341_vm0, %v2145_v49  ;;  %v1165_v13 = vpop.f32.mrb[17].mxu0 }
 0x42b   : > { %1244 = vst.msk [vmem:[%s3385_s16] sm:$0xff] %vm341_vm0, %v1165_v13 }
 0x432   : > { %v2154_v32 = vpop.f32.mrb[0].mxu1 }
 0x433   : > { %1251 = vst.msk [vmem:[%s3385_s16 + $0x38] sm:$0xff] %vm341_vm0, %v2154_v32  ;;  %v1195_v42 = vpop.f32.mrb[1].mxu1 }
 0x434   : > { %1250 = vst.msk [vmem:[%s3385_s16 + $0x30] sm:$0xff] %vm341_vm0, %v1195_v42 }
 0x436   : > { %v2157_v8 = vpop.f32.mrb[2].mxu1 }
 0x437   : > { %1253 = vst.msk [vmem:[%s3385_s16 + $0x48] sm:$0xff] %vm341_vm0, %v2157_v8  ;;  %v1205_v46 = vpop.f32.mrb[3].mxu1 }
 0x438   : > { %1252 = vst.msk [vmem:[%s3385_s16 + $0x40] sm:$0xff] %vm341_vm0, %v1205_v46 }
 0x43d   : > { %v2148_v18 = vpop.f32.mrb[18].mxu0  ;;  %v2160_v47 = vpop.f32.mrb[4].mxu1 }
 0x43e   : > { %1247 = vst.msk [vmem:[%s3385_s16 + $0x18] sm:$0xff] %vm341_vm0, %v2148_v18  ;;  %1255 = vst.msk [vmem:[%s3385_s16 + $0x58] sm:$0xff] %vm341_vm0, %v2160_v47  ;;  %v1175_v63 = vpop.f32.mrb[19].mxu0  ;;  %v1215_v45 = vpop.f32.mrb[5].mxu1 }
 0x43f   : > { %1246 = vst.msk [vmem:[%s3385_s16 + $0x10] sm:$0xff] %vm341_vm0, %v1175_v63  ;;  %1254 = vst.msk [vmem:[%s3385_s16 + $0x50] sm:$0xff] %vm341_vm0, %v1215_v45 }
 0x445   : > { %v2151_v48 = vpop.f32.mrb[20].mxu0  ;;  %v2163_v52 = vpop.f32.mrb[6].mxu1 }
 0x446   : > { %1249 = vst.msk [vmem:[%s3385_s16 + $0x28] sm:$0xff] %vm341_vm0, %v2151_v48  ;;  %1257 = vst.msk [vmem:[%s3385_s16 + $0x68] sm:$0xff] %vm341_vm0, %v2163_v52  ;;  %v1185_v50 = vpop.f32.mrb[21].mxu0  ;;  %v1225_v6 = vpop.f32.mrb[7].mxu1 }
 0x447   : > { %1248 = vst.msk [vmem:[%s3385_s16 + $0x20] sm:$0xff] %vm341_vm0, %v1185_v50  ;;  %1256 = vst.msk [vmem:[%s3385_s16 + $0x60] sm:$0xff] %vm341_vm0, %v1225_v6 }
 0x448   : > { %1311 = sbr.rel (!%p2731_p5) target bundleno = 1152 (0x480), region = 36 }
 0x44c   : > { %v2166_v22 = vpop.f32.mrb[8].mxu1 }
 0x44d   : > { %1259 = vst.msk [vmem:[%s3385_s16 + $0x78] sm:$0xff] %vm341_vm0, %v2166_v22  ;;  %v1235_v25 = vpop.f32.mrb[9].mxu1 }
 0x44e   : > { %1258 = vst.msk [vmem:[%s3385_s16 + $0x70] sm:$0xff] %vm341_vm0, %v1235_v25 }
 0x44f   : > { %s3724_s18 = smov (!%p1314_p11, %s1313_s18), 16 }
 0x450   : > { %s1984_s13 = sshll.u32 %s3724_s18, 7 }
 0x451   : > { %p1987_p12 = scmp.eq.s32.totalorder %s1984_s13, 0 }
 0x452   : > { %s3434_s14 = sshrl.u32 (!%p1987_p12), %s3724_s18, 4 }
 0x453   : > { %1322 = sbr.rel (%p1987_p12) target bundleno = 1152 (0x480), region = 40  ;;  %p1988_p13 = scmp.le.s32.totalorder (!%p1987_p12), %s3434_s14, 0 }
 0x45a   : > { %1824 = sbr.rel (%p1988_p13) target bundleno = 1131 (0x46b), region = 222  ;;  %s3708_s17 = smov (!%p1988_p13), %s3428_s28 }
 0x45b   : > { %s3709_s20 = smov (!%p1988_p13), %s3385_s16  ;;  %s3443_s19 = smov (!%p1988_p13), 0  }
 0x45c   : > { %s3445_s26 = smov (!%p1988_p13), 0  }
 0x461 LB: >> { %v1414_v20 = vld [vmem:[%s2595_s20] sm:$0xff]  ;;  %v1416_v53 = vld [vmem:[%s2595_s20 + $0x8] sm:$0xff]  ;;  %v1418_v2 = vld [vmem:[%s2595_s20 + $0x10] sm:$0xff]  ;;  %s1446_s13 = sadd.s32 1, %s2599_s19  ;;  %s1408_s26 = sadd.s32 1, %s2603_s26   ;;  %s2603_s26 = sphi %s3445_s26, %s1408_s26   ;;  %s2599_s19 = sphi %s3443_s19, %s3710_s19   ;;  %s2595_s20 = sphi %s3709_s20, %s1451_s20   ;;  %s2591_s17 = sphi %s3708_s17, %s1452_s17  }
 0x462   : >> { %1415 = vst [vmem:[%s2591_s17] sm:$0xff] %v1414_v20  ;;  %1417 = vst [vmem:[%s2591_s17 + $0x8] sm:$0xff] %v1416_v53  ;;  %v1420_v54 = vld [vmem:[%s2595_s20 + $0x18] sm:$0xff]  ;;  %v1422_v39 = vld [vmem:[%s2595_s20 + $0x20] sm:$0xff]  ;;  %p1447_p0 = scmp.ge.s32.totalorder %s1446_s13, %s3434_s14  ;;  %p1407_p1 = scmp.ge.s32.totalorder %s1408_s26, %s3434_s14 }
 0x463   : >> { %1419 = vst [vmem:[%s2591_s17 + $0x10] sm:$0xff] %v1418_v2  ;;  %v1424_v16 = vld [vmem:[%s2595_s20 + $0x28] sm:$0xff]  ;;  %1421 = vst [vmem:[%s2591_s17 + $0x18] sm:$0xff] %v1420_v54  ;;  %v1426_v34 = vld [vmem:[%s2595_s20 + $0x30] sm:$0xff] }
 0x464   : >> { %1423 = vst [vmem:[%s2591_s17 + $0x20] sm:$0xff] %v1422_v39  ;;  %1425 = vst [vmem:[%s2591_s17 + $0x28] sm:$0xff] %v1424_v16  ;;  %v1428_v17 = vld [vmem:[%s2595_s20 + $0x38] sm:$0xff]  ;;  %v1430_v23 = vld [vmem:[%s2595_s20 + $0x40] sm:$0xff]  ;;  %s3726_s13 = smov (%p1447_p0, %s1446_s13), 0  ;;  %1410 = sbr.rel (!%p1407_p1) target bundleno = 1121 (0x461), region = 228 }
 0x465   : >> { %1427 = vst [vmem:[%s2591_s17 + $0x30] sm:$0xff] %v1426_v34  ;;  %1429 = vst [vmem:[%s2591_s17 + $0x38] sm:$0xff] %v1428_v17  ;;  %v1432_v60 = vld [vmem:[%s2595_s20 + $0x48] sm:$0xff]  ;;  %v1434_v40 = vld [vmem:[%s2595_s20 + $0x50] sm:$0xff]  ;;  %s1989_s19 = sshll.u32 %s3726_s13, 7 }
 0x466   : >> { %1431 = vst [vmem:[%s2591_s17 + $0x40] sm:$0xff] %v1430_v23  ;;  %v1436_v58 = vld [vmem:[%s2595_s20 + $0x58] sm:$0xff]  ;;  %1433 = vst [vmem:[%s2591_s17 + $0x48] sm:$0xff] %v1432_v60  ;;  %v1438_v7 = vld [vmem:[%s2595_s20 + $0x60] sm:$0xff] }
 0x467   : >> { %1435 = vst [vmem:[%s2591_s17 + $0x50] sm:$0xff] %v1434_v40  ;;  %1437 = vst [vmem:[%s2591_s17 + $0x58] sm:$0xff] %v1436_v58  ;;  %v1440_v3 = vld [vmem:[%s2595_s20 + $0x68] sm:$0xff]  ;;  %v1442_v4 = vld [vmem:[%s2595_s20 + $0x70] sm:$0xff] }
 0x468   : >> { %1439 = vst [vmem:[%s2591_s17 + $0x60] sm:$0xff] %v1438_v7  ;;  %1441 = vst [vmem:[%s2591_s17 + $0x68] sm:$0xff] %v1440_v3  ;;  %v1444_v57 = vld [vmem:[%s2595_s20 + $0x78] sm:$0xff]  ;;  %s1451_s20 = scalar_lea.vmem %s3385_s16, %s1989_s19 [#allocation2]  }
 0x469   : >> { %1443 = vst [vmem:[%s2591_s17 + $0x70] sm:$0xff] %v1442_v4  ;;  %1445 = vst [vmem:[%s2591_s17 + $0x78] sm:$0xff] %v1444_v57  ;;  %s1452_s17 = scalar_lea.vmem %s3428_s28, %s1989_s19   ;;  %s3710_s19 = smov %s3726_s13 }
 0x46b PF: > { %s3503_s10 = sand.u32 15, %s3724_s18   ;;  %s2021_s15 = sshll.u32 %s3434_s14, 7 }
 0x46c   : > { %s1457_s0 = scalar_lea.vmem %s3385_s16, %s2021_s15 [#allocation2]   ;;  %s1459_s1 = scalar_lea.vmem %s3428_s28, %s2021_s15  }
 0x46d   : > { %p1994_p2 = scmp.le.s32.totalorder %s3503_s10, 0 }
 0x46e   : > { %s2605_s2 = smov (!%p1994_p2), %s1459_s1   ;;  %s2609_s3 = smov (!%p1994_p2), %s1457_s0  }
 0x46f   : > { %1838 = sbr.rel (%p1994_p2) target bundleno = 1152 (0x480), region = 233  ;;  %s2613_s30 = smov (!%p1994_p2), 0  }
 0x470   : > { %s2617_s13 = smov (!%p1994_p2), 0  }
 0x476 LB: >> { %v1469_v59 = vld [vmem:[%s2611_s3] sm:$0xff]  ;;  %s1471_s17 = sadd.s32 1, %s2615_s30  ;;  %s1463_s13 = sadd.s32 1, %s2619_s13   ;;  %s2619_s13 = sphi %s2617_s13, %s1463_s13   ;;  %s2615_s30 = sphi %s2613_s30, %s2614_s30   ;;  %s2611_s3 = sphi %s2609_s3, %s1476_s3   ;;  %s2607_s2 = sphi %s2605_s2, %s1477_s2  }
 0x477   : >> { %1470 = vst [vmem:[%s2607_s2] sm:$0xff] %v1469_v59  ;;  %p1472_p3 = scmp.ge.s32.totalorder %s1471_s17, %s3503_s10  ;;  %p1462_p4 = scmp.ge.s32.totalorder %s1463_s13, %s3503_s10 }
 0x479   : >> { %s3728_s17 = smov (%p1472_p3, %s1471_s17), 0  ;;  %1465 = sbr.rel (!%p1462_p4) target bundleno = 1142 (0x476), region = 239 }
 0x47a   : >> { %s1995_s15 = sshll.u32 %s3728_s17, 3  ;;  %s2614_s30 = smov %s3728_s17  }
 0x47b   : >> { %s1476_s3 = scalar_lea.vmem %s1457_s0, %s1995_s15 [#allocation2]   ;;  %s1477_s2 = scalar_lea.vmem %s1459_s1, %s1995_s15  }
 0x480 PF: > { %s3515_s18 = scalar_lea.hbm %s3693_s4, %s2742_s9  ;;  %s3711_s28 = scalar_lea.vmem [#allocation3], %s2860_s29 }
 0x481   : > { %s1490_s14 = sshll.u32 %s3711_s28, 4  ;;  %s2654_s2 = smov [#allocation3]   ;;  %s1491_s14 = int_to_ptr.vmem [resolvable:$true] %s1490_s14 }
 0x482   : > { %s2429_s20 = scalar_lea.vmem %s1491_s14, 16  ;;  %s2433_s0 = sshll.u32 %s2654_s2, 4  ;;  %s2434_s0 = int_to_ptr.vmem [resolvable:$false] %s2433_s0 }
 0x483   : > { %p2430_p7 = scmp.ne.s32.totalorder %s1491_s14, %s2429_s20  ;;  %s2435_s1 = scalar_lea.vmem %s2434_s0, 32 }
 0x484   : > { %p2436_p10 = scmp.lt.s32.totalorder %s1491_s14, %s2434_s0  ;;  %p2437_p11 = scmp.lt.s32.totalorder %s2435_s1, %s2429_s20 }
 0x485   : > { %p2431_p8 = pnand %p2430_p7, %p2731_p5 }
 0x486   : > { %p2438_p12 = por %p2437_p11, %p2436_p10 }
 0x487   : > { %p2432_p9 = pneg %p2431_p8 }
 0x489   : > { %p2439_p13 = pnand %p2438_p12, %p2432_p9 }
 0x48b   : > { %2442 = shalt.err (!%p2439_p13)
}
 0x48c   : > { %s2443_s3 = scalar_lea.hbm %s3515_s18, 16  ;;  %s2447_s19 = scalar_lea.hbm %s3693_s4, 32 }
 0x48d   : > { %p2444_p0 = scmp.ne.s32.totalorder %s3515_s18, %s2443_s3  ;;  %p2448_p3 = scmp.lt.u32.totalorder %s3515_s18, %s3693_s4 }
 0x48e   : > { %p2449_p4 = scmp.lt.u32.totalorder %s2447_s19, %s2443_s3  ;;  %p2451_p8 = scmp.lt.u32.totalorder %s2443_s3, %s3515_s18 }
 0x48f   : > { %p2445_p1 = pnand %p2444_p0, %p2731_p5 }
 0x490   : > { %p2450_p7 = por %p2449_p4, %p2448_p3 }
 0x491   : > { %p2446_p2 = pneg %p2445_p1 }
 0x492   : > { %p2452_p9 = por %p2451_p8, %p2450_p7 }
 0x494   : > { %p2453_p10 = pnand %p2452_p9, %p2446_p2 }
 0x496   : > { %2456 = shalt.err (!%p2453_p10)
}
 0x497   : > { %s3712_s15 = scalar_lea.sflag [#allocation4], %s2860_s29  ;;  %1496 = sbr.rel (!%p2731_p5) target bundleno = 1211 (0x4bb), region = 92 }
 0x498   : > { %2223 = dma.vmem_to_hbm [thread:$0]  (%p2731_p5), %s1491_s14, 16, %s3515_s18, %s3712_s15  }
 0x499   : > { %s1498_s16 = ssub.s32 (%p2731_p5), 18, %s2742_s9  ;;  %s3713_s20 = scalar_lea.sflag (%p2731_p5), [#allocation6], %s2860_s29 }
 0x49a   : > { %p1499_p11 = scmp.lt.s32.totalorder (%p2731_p5), %s1498_s16, 16 }
 0x49e   : > { %s3730_s16 = smov (!%p1499_p11, %s1498_s16), 16 }
 0x49f   : > { %s3541_s30 = sshll.u32 %s3730_s16, 7 }
 0x4a0   : > { %s1503_s28 = ssub.s32 2048, %s3541_s30 }
 0x4a1   : > { %1504 = vsyncadd %s3713_s20, %s1503_s28  ;;  %p2000_p12 = scmp.ne.s32.totalorder %s3541_s30, 0  ;;  %s2023_s18 = sshll.u32 %s2714_s25, 11 }
 0x4a2   : > { %s3551_s0 = scalar_lea.hbm %s3694_s5, %s2023_s18  ;;  %s1509_s1 = sshll.u32 %s2933_s12, 4  ;;  %s3554_s1 = int_to_ptr.vmem [resolvable:$true] %s1509_s1 }
 0x4a3   : > { %s2457_s3 = scalar_lea.vmem %s3554_s1, %s3541_s30  ;;  %s2655_s10 = smov [#allocation5]  }
 0x4a4   : > { %p2458_p13 = scmp.ne.s32.totalorder %s3554_s1, %s2457_s3  ;;  %s2461_s26 = sshll.u32 %s2655_s10, 4  ;;  %s2462_s26 = int_to_ptr.vmem [resolvable:$false] %s2461_s26 }
 0x4a5   : > { %s2463_s19 = scalar_lea.vmem %s2462_s26, 4096  ;;  %p2464_p2 = scmp.lt.s32.totalorder %s3554_s1, %s2462_s26 }
 0x4a6   : > { %p2459_p0 = pnand %p2458_p13, %p2000_p12  ;;  %p2465_p3 = scmp.lt.s32.totalorder %s2463_s19, %s2457_s3 }
 0x4a8   : > { %p2460_p1 = pneg %p2459_p0  ;;  %p2466_p4 = por %p2465_p3, %p2464_p2 }
 0x4aa   : > { %p2467_p7 = pnand %p2466_p4, %p2460_p1 }
 0x4ac   : > { %2470 = shalt.err (!%p2467_p7)
}
 0x4ad   : > { %s2471_s12 = scalar_lea.hbm %s3551_s0, %s3541_s30  ;;  %s2475_s15 = scalar_lea.hbm %s3694_s5, 2304 }
 0x4ae   : > { %p2472_p8 = scmp.ne.s32.totalorder %s3551_s0, %s2471_s12  ;;  %p2476_p11 = scmp.lt.u32.totalorder %s3551_s0, %s3694_s5 }
 0x4af   : > { %p2477_p13 = scmp.lt.u32.totalorder %s2475_s15, %s2471_s12  ;;  %p2479_p1 = scmp.lt.u32.totalorder %s2471_s12, %s3551_s0 }
 0x4b0   : > { %p2473_p9 = pnand %p2472_p8, %p2000_p12 }
 0x4b1   : > { %p2478_p0 = por %p2477_p13, %p2476_p11 }
 0x4b2   : > { %p2474_p10 = pneg %p2473_p9 }
 0x4b3   : > { %p2480_p2 = por %p2479_p1, %p2478_p0 }
 0x4b5   : > { %p2481_p3 = pnand %p2480_p2, %p2474_p10 }
 0x4b7   : > { %2484 = shalt.err (!%p2481_p3)
}
 0x4b8   : > { %s2656_s20 = smov 128   ;;  %s2657_s18 = smov 8  }
 0x4b9   : > { %s3714_s14 = scalar_lea.sflag [#allocation6], %s2860_s29 }
 0x4ba   : > { %1515 = dma.vmem_to_hbm [thread:$0]  (%p2000_p12), %s3554_s1, %s3541_s30, %s3551_s0, %s3714_s14, %s2656_s20, %s2656_s20, %s2657_s18  }
 0x4bb PF: > { %1518 = sbr.rel (!%p2731_p5) target bundleno = 1267 (0x4f3), region = 96  ;;  %s1520_s2 = ssub.s32 (%p2731_p5), 18, %s2742_s9 }
 0x4bc   : > { %s2024_s3 = sshll.u32 (%p2731_p5), %s2714_s25, 7  ;;  %p1521_p4 = scmp.lt.s32.totalorder (%p2731_p5), %s1520_s2, 16 }
 0x4bd   : > { %s3589_s19 = scalar_lea.vmem (%p2731_p5), %s3695_s6, %s2024_s3  }
 0x4c2   : > { %s3732_s2 = smov (!%p1521_p4, %s1520_s2), 16 }
 0x4c3   : > { %s2005_s12 = sshll.u32 %s3732_s2, 7 }
 0x4c4   : > { %p2008_p7 = scmp.eq.s32.totalorder %s2005_s12, 0 }
 0x4c5   : > { %s3595_s29 = sshrl.u32 (!%p2008_p7), %s3732_s2, 4 }
 0x4c6   : > { %1529 = sbr.rel (%p2008_p7) target bundleno = 1267 (0x4f3), region = 100  ;;  %p2009_p5 = scmp.le.s32.totalorder (!%p2008_p7), %s3595_s29, 0 }
 0x4cd   : > { %1852 = sbr.rel (%p2009_p5) target bundleno = 1246 (0x4de), region = 244  ;;  %s3715_s25 = smov (!%p2009_p5), %s3589_s19 }
 0x4ce   : > { %s3716_s7 = smov (!%p2009_p5), %s2869_s11  ;;  %s3604_s9 = smov (!%p2009_p5), 0  }
 0x4cf   : > { %s3606_s30 = smov (!%p2009_p5), 0  }
 0x4d4 LB: >> { %v1621_v24 = vld [vmem:[%s2627_s7] sm:$0xff]  ;;  %v1623_v0 = vld [vmem:[%s2627_s7 + $0x8] sm:$0xff]  ;;  %v1625_v14 = vld [vmem:[%s2627_s7 + $0x10] sm:$0xff]  ;;  %s1653_s0 = sadd.s32 1, %s2631_s9  ;;  %s1615_s30 = sadd.s32 1, %s2635_s30   ;;  %s2635_s30 = sphi %s3606_s30, %s1615_s30   ;;  %s2631_s9 = sphi %s3604_s9, %s3717_s9   ;;  %s2627_s7 = sphi %s3716_s7, %s1658_s7   ;;  %s2623_s25 = sphi %s3715_s25, %s1659_s25  }
 0x4d5   : >> { %1622 = vst [vmem:[%s2623_s25] sm:$0xff] %v1621_v24  ;;  %1624 = vst [vmem:[%s2623_s25 + $0x8] sm:$0xff] %v1623_v0  ;;  %v1627_v27 = vld [vmem:[%s2627_s7 + $0x18] sm:$0xff]  ;;  %v1629_v37 = vld [vmem:[%s2627_s7 + $0x20] sm:$0xff]  ;;  %p1654_p12 = scmp.ge.s32.totalorder %s1653_s0, %s3595_s29  ;;  %p1614_p8 = scmp.ge.s32.totalorder %s1615_s30, %s3595_s29 }
 0x4d6   : >> { %1626 = vst [vmem:[%s2623_s25 + $0x10] sm:$0xff] %v1625_v14  ;;  %v1631_v33 = vld [vmem:[%s2627_s7 + $0x28] sm:$0xff]  ;;  %1628 = vst [vmem:[%s2623_s25 + $0x18] sm:$0xff] %v1627_v27  ;;  %v1633_v15 = vld [vmem:[%s2627_s7 + $0x30] sm:$0xff] }
 0x4d7   : >> { %1630 = vst [vmem:[%s2623_s25 + $0x20] sm:$0xff] %v1629_v37  ;;  %1632 = vst [vmem:[%s2623_s25 + $0x28] sm:$0xff] %v1631_v33  ;;  %v1635_v1 = vld [vmem:[%s2627_s7 + $0x38] sm:$0xff]  ;;  %v1637_v62 = vld [vmem:[%s2627_s7 + $0x40] sm:$0xff]  ;;  %s3734_s0 = smov (%p1654_p12, %s1653_s0), 0  ;;  %1617 = sbr.rel (!%p1614_p8) target bundleno = 1236 (0x4d4), region = 250 }
 0x4d8   : >> { %1634 = vst [vmem:[%s2623_s25 + $0x30] sm:$0xff] %v1633_v15  ;;  %1636 = vst [vmem:[%s2623_s25 + $0x38] sm:$0xff] %v1635_v1  ;;  %v1639_v55 = vld [vmem:[%s2627_s7 + $0x48] sm:$0xff]  ;;  %v1641_v10 = vld [vmem:[%s2627_s7 + $0x50] sm:$0xff]  ;;  %s2010_s1 = sshll.u32 %s3734_s0, 7  ;;  %s3717_s9 = smov %s3734_s0 }
 0x4d9   : >> { %1638 = vst [vmem:[%s2623_s25 + $0x40] sm:$0xff] %v1637_v62  ;;  %v1643_v36 = vld [vmem:[%s2627_s7 + $0x58] sm:$0xff]  ;;  %1640 = vst [vmem:[%s2623_s25 + $0x48] sm:$0xff] %v1639_v55  ;;  %v1645_v29 = vld [vmem:[%s2627_s7 + $0x60] sm:$0xff] }
 0x4da   : >> { %1642 = vst [vmem:[%s2623_s25 + $0x50] sm:$0xff] %v1641_v10  ;;  %1644 = vst [vmem:[%s2623_s25 + $0x58] sm:$0xff] %v1643_v36  ;;  %v1647_v19 = vld [vmem:[%s2627_s7 + $0x68] sm:$0xff]  ;;  %v1649_v51 = vld [vmem:[%s2627_s7 + $0x70] sm:$0xff] }
 0x4db   : >> { %1646 = vst [vmem:[%s2623_s25 + $0x60] sm:$0xff] %v1645_v29  ;;  %1648 = vst [vmem:[%s2623_s25 + $0x68] sm:$0xff] %v1647_v19  ;;  %v1651_v21 = vld [vmem:[%s2627_s7 + $0x78] sm:$0xff]  ;;  %s1658_s7 = scalar_lea.vmem %s2869_s11, %s2010_s1 [#allocation7]  }
 0x4dc   : >> { %1650 = vst [vmem:[%s2623_s25 + $0x70] sm:$0xff] %v1649_v51  ;;  %1652 = vst [vmem:[%s2623_s25 + $0x78] sm:$0xff] %v1651_v21  ;;  %s1659_s25 = scalar_lea.vmem %s3589_s19, %s2010_s1  }
 0x4de PF: > { %s3664_s13 = sand.u32 15, %s3732_s2   ;;  %s2025_s17 = sshll.u32 %s3595_s29, 7 }
 0x4df   : > { %s1664_s15 = scalar_lea.vmem %s2869_s11, %s2025_s17 [#allocation7]   ;;  %s1666_s16 = scalar_lea.vmem %s3589_s19, %s2025_s17  }
 0x4e0   : > { %p2015_p9 = scmp.le.s32.totalorder %s3664_s13, 0 }
 0x4e1   : > { %s2637_s28 = smov (!%p2015_p9), %s1666_s16   ;;  %s2641_s20 = smov (!%p2015_p9), %s1664_s15  }
 0x4e2   : > { %1866 = sbr.rel (%p2015_p9) target bundleno = 1267 (0x4f3), region = 255  ;;  %s2645_s18 = smov (!%p2015_p9), 0  }
 0x4e3   : > { %s2649_s14 = smov (!%p2015_p9), 0  }
 0x4e9 LB: >> { %v1676_v41 = vld [vmem:[%s2643_s20] sm:$0xff]  ;;  %s1678_s2 = sadd.s32 1, %s2647_s18  ;;  %s1670_s14 = sadd.s32 1, %s2651_s14   ;;  %s2651_s14 = sphi %s2649_s14, %s1670_s14   ;;  %s2647_s18 = sphi %s2645_s18, %s2646_s18   ;;  %s2643_s20 = sphi %s2641_s20, %s1683_s20   ;;  %s2639_s28 = sphi %s2637_s28, %s1684_s28  }
 0x4ea   : >> { %1677 = vst [vmem:[%s2639_s28] sm:$0xff] %v1676_v41  ;;  %p1679_p10 = scmp.ge.s32.totalorder %s1678_s2, %s3664_s13  ;;  %p1669_p11 = scmp.ge.s32.totalorder %s1670_s14, %s3664_s13 }
 0x4ec   : >> { %s3736_s2 = smov (%p1679_p10, %s1678_s2), 0  ;;  %1672 = sbr.rel (!%p1669_p11) target bundleno = 1257 (0x4e9), region = 261 }
 0x4ed   : >> { %s2016_s11 = sshll.u32 %s3736_s2, 3  ;;  %s2646_s18 = smov %s3736_s2  }
 0x4ee   : >> { %s1683_s20 = scalar_lea.vmem %s1664_s15, %s2016_s11 [#allocation7]   ;;  %s1684_s28 = scalar_lea.vmem %s1666_s16, %s2016_s11  }
 0x4f3 PF: > { %p2233_p13 = scmp.ge.s32.totalorder %s2587_s24, 2  ;;  %s1703_s3 = sand.u32 1, %s2575_s21  }
 0x4f4   : > { %s1704_s10 = scalar_lea.sflag [#allocation4], %s1703_s3 }
 0x4f5   : > { %p2227_p0 = pnand %p2233_p13, %p2735_p6 }
 0x4f7   : > { %2566 = dma.done.wait (!%p2227_p0), %s1704_s10, 16  }
 0x4f8   : > { %2568 = vsyncadd (!%p2227_p0), %s1704_s10, 4294967280  ;;  %s1712_s26 = scalar_lea.sflag [#allocation6], %s1703_s3 }
 0x4f9   : > { %2570 = dma.done.wait (!%p2227_p0), %s1712_s26, 2048  }
 0x4fa   : > { %2572 = vsyncadd (!%p2227_p0), %s1712_s26, 4294965248  ;;  %s3718_s19 = sld [smem:[#allocation10_spill]]  ;;  %p20_p1 = scmp.ge.s32.totalorder %s2718_s27, 4  }
 0x4fb   : > { %s3719_s21 = smov %s2579_s22  ;;  %s3720_s22 = smov %s2583_s23 }
 0x4fc   : > { %s3722_s24 = smov %s2718_s27  ;;  %22 = sbr.rel (!%p20_p1) target bundleno = 10 (0xa), region = 272 }
 0x500   : > { %s3721_s23 = smov %s3718_s19 }
 0x503   :  { %1724 = vsyncpa [#allocation4], 1 }
 0x504   :  { %1726 = vsyncpa [#allocation4 + $0x1], 1 }
 0x505   :  { %1727 = vsyncpa [#allocation6], 1 }
 0x506   :  { %1729 = vsyncpa [#allocation6 + $0x1], 1 }

</bundles_post_ra>
